<compile_context>
chip_gen: v5e
topology: v5e:2x2
jax: 0.10.0
libtpu: 0.0.40
codegen_flags: <defaults>
</compile_context>

<pallas_src>
import functools
import math

import jax
import jax.numpy as jnp
from jax.experimental import pallas as pl
from jax.experimental.pallas import tpu as pltpu

VMEM_SPEC = pl.BlockSpec(memory_space=pltpu.MemorySpace.VMEM)
BF16 = jnp.bfloat16
F32 = jnp.float32

# Batched (over the head axis, dim 0) dot_general dimension numbers.
_DN_STD = (((2,), (1,)), ((0,), (0,)))   # 'nij,njk->nik'
_DN_TT = (((2,), (2,)), ((0,), (0,)))    # 'nij,nkj->nik' (contract last of both)


# ---------------------------------------------------------------------------
# In-kernel helpers
# ---------------------------------------------------------------------------
def _layernorm(x, g, b, eps):
    mu = jnp.mean(x, axis=-1, keepdims=True)
    var = jnp.mean((x - mu) ** 2, axis=-1, keepdims=True)
    return (x - mu) * jax.lax.rsqrt(var + eps) * g + b


def _gelu(x):
    # tanh-approx GELU (HF "gelu" is erf-based; ~1e-3 relative difference)
    c = math.sqrt(2.0 / math.pi)
    return 0.5 * x * (1.0 + jnp.tanh(c * (x + 0.044715 * x * x * x)))


# ---------------------------------------------------------------------------
# Fused BERT forward kernel
# ---------------------------------------------------------------------------
def _bert_kernel(ids_ref, lab_ref, wemb_ref, pos_ref, emb_g_ref, emb_b_ref,
                 wq_ref, bq_ref, wkT_ref, bk_ref, wv_ref, bv_ref,
                 wo_ref, bo_ref, ln1g_ref, ln1b_ref,
                 wi_ref, bi_ref, wo2_ref, bo2_ref, ln2g_ref, ln2b_ref,
                 pool_w_ref, pool_b_ref, cls_w_ref, cls_b_ref,
                 loss_ref, logits_ref, attn_ref,
                 *, L, B, S, H, nh, hd, V, C, eps):
    del hd  # scale already folded into wq/bq; head dim implicit in shapes
    BS = B * S

    # ---- embeddings: token gather expressed as a one-hot matmul on the MXU --
    onehot_tok = jnp.where(
        ids_ref[...] == jax.lax.broadcasted_iota(jnp.int32, (BS, V), 1),
        1.0, 0.0).astype(BF16)
    emb = (jnp.dot(onehot_tok, wemb_ref[...], preferred_element_type=F32)
           + pos_ref[...])                                     # + pos/type rows
    h = _layernorm(emb, emb_g_ref[...], emb_b_ref[...], eps)

    for l in range(L):               # static unroll (tiny L); see TODO above
        h16 = h.astype(BF16)

        # ---- self-attention: head-batched MXU dots, lane-aligned throughout -
        for b in range(B):           # B=2; sublane-aligned row blocks of size S
            hb = jnp.broadcast_to(h16[b * S:(b + 1) * S, :][None], (nh, S, H))
            q = jax.lax.dot_general(hb, wq_ref[l], _DN_STD,
                                    preferred_element_type=F32) + bq_ref[l]   # (nh,S,hd)
            kT = jax.lax.dot_general(wkT_ref[l], hb, _DN_TT,
                                     preferred_element_type=F32) + bk_ref[l]  # (nh,hd,S)
            v = jax.lax.dot_general(hb, wv_ref[l], _DN_STD,
                                    preferred_element_type=F32) + bv_ref[l]   # (nh,S,hd)

            s = jax.lax.dot_general(q.astype(BF16), kT.astype(BF16), _DN_STD,
                                    preferred_element_type=F32)               # (nh,S,S)
            m = jnp.max(s, axis=-1, keepdims=True)
            p = jnp.exp(s - m)
            p = p * pl.reciprocal(jnp.sum(p, axis=-1, keepdims=True), approx=True)

            ctx = jax.lax.dot_general(p.astype(BF16), v.astype(BF16), _DN_STD,
                                      preferred_element_type=F32)             # (nh,S,hd)
            # per-head output projection summed over heads == concat(heads) @ Wo
            oh = jax.lax.dot_general(ctx.astype(BF16), wo_ref[l], _DN_STD,
                                     preferred_element_type=F32)              # (nh,S,H)
            attn_ref[b * S:(b + 1) * S, :] = jnp.sum(oh, axis=0)

        attn_out = attn_ref[...] + bo_ref[l]
        h = _layernorm(attn_out + h, ln1g_ref[l], ln1b_ref[l], eps)

        # ---- FFN (GELU) + residual LayerNorm --------------------------------
        h16 = h.astype(BF16)
        inter = _gelu(jnp.dot(h16, wi_ref[l], preferred_element_type=F32)
                      + bi_ref[l])
        ffn = (jnp.dot(inter.astype(BF16), wo2_ref[l], preferred_element_type=F32)
               + bo2_ref[l])
        h = _layernorm(ffn + h, ln2g_ref[l], ln2b_ref[l], eps)

    # ---- pooler on CLS tokens (reshape select, no concat), classifier -------
    cls_tok = h.reshape(B, S, H)[:, 0, :]                                      # (B,H)
    pooled = jnp.tanh(jnp.dot(cls_tok.astype(BF16), pool_w_ref[...],
                              preferred_element_type=F32) + pool_b_ref[...])
    logits = (jnp.dot(pooled.astype(BF16), cls_w_ref[...],
                      preferred_element_type=F32) + cls_b_ref[...])
    logits_ref[...] = logits

    # ---- cross-entropy loss (label one-hot built in-kernel) ------------------
    onehot_lab = jnp.where(
        lab_ref[...] == jax.lax.broadcasted_iota(jnp.int32, (B, C), 1), 1.0, 0.0)
    m = jnp.max(logits, axis=-1, keepdims=True)
    lse = jnp.log(jnp.sum(jnp.exp(logits - m), axis=-1, keepdims=True)) + m
    nll = lse - jnp.sum(logits * onehot_lab, axis=-1, keepdims=True)
    loss_ref[...] = jnp.mean(nll).reshape(1, 1)
    # TODO(synk): move the scalar loss (and (B,C) logits) to SMEM outputs to
    # skip the masked vst path on these tiny blocks.


# ---------------------------------------------------------------------------
# Small BERT-for-sequence-classification config / params
# ---------------------------------------------------------------------------
CFG = dict(vocab=100, hidden=32, heads=2, layers=2, intermediate=64,
           max_pos=32, type_vocab=2, num_labels=2)


def init_params(key, cfg):
    H, I = cfg["hidden"], cfg["intermediate"]

    def nrm(k, shape):
        return 0.02 * jax.random.normal(k, shape, jnp.float32)

    keys = iter(jax.random.split(key, 8 + 14 * cfg["layers"]))
    p = {
        "word_emb": nrm(next(keys), (cfg["vocab"], H)),
        "pos_emb": nrm(next(keys), (cfg["max_pos"], H)),
        "type_emb": nrm(next(keys), (cfg["type_vocab"], H)),
        "emb_ln_g": jnp.ones((H,), jnp.float32),
        "emb_ln_b": jnp.zeros((H,), jnp.float32),
        "pool_w": nrm(next(keys), (H, H)),
        "pool_b": jnp.zeros((H,), jnp.float32),
        "cls_w": nrm(next(keys), (H, cfg["num_labels"])),
        "cls_b": jnp.zeros((cfg["num_labels"],), jnp.float32),
        "layers": [],
    }
    for _ in range(cfg["layers"]):
        p["layers"].append({
            "wq": nrm(next(keys), (H, H)), "bq": jnp.zeros((H,), jnp.float32),
            "wk": nrm(next(keys), (H, H)), "bk": jnp.zeros((H,), jnp.float32),
            "wv": nrm(next(keys), (H, H)), "bv": jnp.zeros((H,), jnp.float32),
            "wo": nrm(next(keys), (H, H)), "bo": jnp.zeros((H,), jnp.float32),
            "ln1_g": jnp.ones((H,), jnp.float32), "ln1_b": jnp.zeros((H,), jnp.float32),
            "wi": nrm(next(keys), (H, I)), "bi": jnp.zeros((I,), jnp.float32),
            "wo2": nrm(next(keys), (I, H)), "bo2": jnp.zeros((H,), jnp.float32),
            "ln2_g": jnp.ones((H,), jnp.float32), "ln2_b": jnp.zeros((H,), jnp.float32),
        })
    return p


def bert_single_forward(params, input_ids, labels, cfg=CFG):
    """Mirrors BERT_Single.forward(text, label) -> (loss, logits)."""
    B, S = input_ids.shape
    H, nh, L, C = cfg["hidden"], cfg["heads"], cfg["layers"], cfg["num_labels"]
    I, V = cfg["intermediate"], cfg["vocab"]
    hd = H // nh
    scale = 1.0 / math.sqrt(hd)

    layers = params["layers"]

    def stack(name):
        return jnp.stack([lyr[name] for lyr in layers])

    # Per-head weight staging: heads live on a leading batch dim so the kernel
    # never slices the lane dim at sub-128 offsets; K weights are pre-transposed
    # (K^T comes straight out of the MXU); 1/sqrt(hd) folded into Q; MXU
    # operands in bf16, biases/LN params kept f32.
    wq = (stack("wq") * scale).reshape(L, H, nh, hd).transpose(0, 2, 1, 3).astype(BF16)
    bq = (stack("bq") * scale).reshape(L, nh, 1, hd)
    wkT = stack("wk").reshape(L, H, nh, hd).transpose(0, 2, 3, 1).astype(BF16)
    bk = stack("bk").reshape(L, nh, hd, 1)
    wv = stack("wv").reshape(L, H, nh, hd).transpose(0, 2, 1, 3).astype(BF16)
    bv = stack("bv").reshape(L, nh, 1, hd)
    wo = stack("wo").reshape(L, nh, hd, H).astype(BF16)
    bo = stack("bo").reshape(L, 1, H)
    ln1g = stack("ln1_g").reshape(L, 1, H)
    ln1b = stack("ln1_b").reshape(L, 1, H)
    wi = stack("wi").astype(BF16)                      # (L, H, I)
    bi = stack("bi").reshape(L, 1, I)
    wo2 = stack("wo2").astype(BF16)                    # (L, I, H)
    bo2 = stack("bo2").reshape(L, 1, H)
    ln2g = stack("ln2_g").reshape(L, 1, H)
    ln2b = stack("ln2_b").reshape(L, 1, H)

    # Position + token-type (all type-ids zero) embedding rows, pre-tiled.
    pos_type = jnp.tile(params["pos_emb"][:S] + params["type_emb"][0][None, :],
                        (B, 1))                        # (B*S, H) f32

    kernel = functools.partial(_bert_kernel, L=L, B=B, S=S, H=H, nh=nh, hd=hd,
                               V=V, C=C, eps=1e-12)
    loss, logits = pl.pallas_call(
        kernel,
        out_shape=(jax.ShapeDtypeStruct((1, 1), jnp.float32),
                   jax.ShapeDtypeStruct((B, C), jnp.float32)),
        in_specs=[VMEM_SPEC] * 26,
        out_specs=(VMEM_SPEC, VMEM_SPEC),
        scratch_shapes=[pltpu.VMEM((B * S, H), jnp.float32)],
    )(input_ids.reshape(B * S, 1).astype(jnp.int32),
      labels.reshape(B, 1).astype(jnp.int32),
      params["word_emb"].astype(BF16),
      pos_type,
      params["emb_ln_g"].reshape(1, H), params["emb_ln_b"].reshape(1, H),
      wq, bq, wkT, bk, wv, bv, wo, bo, ln1g, ln1b,
      wi, bi, wo2, bo2, ln2g, ln2b,
      params["pool_w"].astype(BF16), params["pool_b"].reshape(1, H),
      params["cls_w"].astype(BF16), params["cls_b"].reshape(1, C))
    return loss[0, 0], logits


if __name__ == "__main__":
    key = jax.random.PRNGKey(0)
    k_param, k_ids, k_lab = jax.random.split(key, 3)

    B, S = 2, 8
    params = init_params(k_param, CFG)
    input_ids = jax.random.randint(k_ids, (B, S), 0, CFG["vocab"], dtype=jnp.int32)
    labels = jax.random.randint(k_lab, (B,), 0, CFG["num_labels"], dtype=jnp.int32)

    loss, logits = jax.jit(bert_single_forward)(params, input_ids, labels)
    jax.block_until_ready((loss, logits))

    assert logits.shape == (B, CFG["num_labels"])
    assert loss.shape == ()
    assert bool(jnp.isfinite(loss))
    print("KERNEL_OK")
</pallas_src>

<mosaic_0001>
module attributes {stable_mosaic.version = 11 : i64} {
  func.func @_bert_kernel(%arg0: memref<16x1xi32, #tpu.memory_space<vmem>>, %arg1: memref<2x1xi32, #tpu.memory_space<vmem>>, %arg2: memref<100x32xbf16, #tpu.memory_space<vmem>>, %arg3: memref<16x32xf32, #tpu.memory_space<vmem>>, %arg4: memref<1x32xf32, #tpu.memory_space<vmem>>, %arg5: memref<1x32xf32, #tpu.memory_space<vmem>>, %arg6: memref<2x2x32x16xbf16, #tpu.memory_space<vmem>>, %arg7: memref<2x2x1x16xf32, #tpu.memory_space<vmem>>, %arg8: memref<2x2x16x32xbf16, #tpu.memory_space<vmem>>, %arg9: memref<2x2x16x1xf32, #tpu.memory_space<vmem>>, %arg10: memref<2x2x32x16xbf16, #tpu.memory_space<vmem>>, %arg11: memref<2x2x1x16xf32, #tpu.memory_space<vmem>>, %arg12: memref<2x2x16x32xbf16, #tpu.memory_space<vmem>>, %arg13: memref<2x1x32xf32, #tpu.memory_space<vmem>>, %arg14: memref<2x1x32xf32, #tpu.memory_space<vmem>>, %arg15: memref<2x1x32xf32, #tpu.memory_space<vmem>>, %arg16: memref<2x32x64xbf16, #tpu.memory_space<vmem>>, %arg17: memref<2x1x64xf32, #tpu.memory_space<vmem>>, %arg18: memref<2x64x32xbf16, #tpu.memory_space<vmem>>, %arg19: memref<2x1x32xf32, #tpu.memory_space<vmem>>, %arg20: memref<2x1x32xf32, #tpu.memory_space<vmem>>, %arg21: memref<2x1x32xf32, #tpu.memory_space<vmem>>, %arg22: memref<32x32xbf16, #tpu.memory_space<vmem>>, %arg23: memref<1x32xf32, #tpu.memory_space<vmem>>, %arg24: memref<32x2xbf16, #tpu.memory_space<vmem>>, %arg25: memref<1x2xf32, #tpu.memory_space<vmem>>, %arg26: memref<1x1xf32, #tpu.memory_space<vmem>>, %arg27: memref<2x2xf32, #tpu.memory_space<vmem>>, %arg28: memref<16x32xf32, #tpu.memory_space<vmem>>) attributes {dimension_semantics = [], scalar_prefetch = 0 : i64, scratch_operands = 1 : i64, tpu.core_type = #tpu.core_type<tc>} {
    %c0 = arith.constant 0 : index
    %c0_0 = arith.constant 0 : index
    %0 = vector.load %arg0[%c0, %c0_0] : memref<16x1xi32, #tpu.memory_space<vmem>>, vector<16x1xi32>
    %1 = tpu.iota {dimensions = array<i32: 1>} : vector<16x100xi32>
    %2 = vector.broadcast %0 : vector<16x1xi32> to vector<16x100xi32>
    %3 = arith.cmpi eq, %2, %1 : vector<16x100xi32>
    %cst = arith.constant 1.000000e+00 : f32
    %cst_1 = arith.constant 0.000000e+00 : f32
    %4 = vector.broadcast %cst : f32 to vector<16x100xf32>
    %5 = vector.broadcast %cst_1 : f32 to vector<16x100xf32>
    %6 = arith.select %3, %4, %5 : vector<16x100xi1>, vector<16x100xf32>
    %7 = arith.truncf %6 : vector<16x100xf32> to vector<16x100xbf16>
    %c0_2 = arith.constant 0 : index
    %c0_3 = arith.constant 0 : index
    %8 = vector.load %arg2[%c0_2, %c0_3] : memref<100x32xbf16, #tpu.memory_space<vmem>>, vector<100x32xbf16>
    %cst_4 = arith.constant dense<0.000000e+00> : vector<16x32xf32>
    %9 = tpu.matmul %7, %8, %cst_4 {dimension_numbers = #tpu.dot_dimension_numbers<[1], [0], [0], [1], [0, 0, 1, 1], [], []>} : vector<16x100xbf16>, vector<100x32xbf16>, vector<16x32xf32> -> vector<16x32xf32>
    %c0_5 = arith.constant 0 : index
    %c0_6 = arith.constant 0 : index
    %10 = vector.load %arg3[%c0_5, %c0_6] : memref<16x32xf32, #tpu.memory_space<vmem>>, vector<16x32xf32>
    %11 = arith.addf %9, %10 : vector<16x32xf32>
    %c0_7 = arith.constant 0 : index
    %c0_8 = arith.constant 0 : index
    %12 = vector.load %arg4[%c0_7, %c0_8] : memref<1x32xf32, #tpu.memory_space<vmem>>, vector<1x32xf32>
    %c0_9 = arith.constant 0 : index
    %c0_10 = arith.constant 0 : index
    %13 = vector.load %arg5[%c0_9, %c0_10] : memref<1x32xf32, #tpu.memory_space<vmem>>, vector<1x32xf32>
    %cst_11 = arith.constant dense<0.000000e+00> : vector<16xf32>
    %14 = vector.multi_reduction <add>, %11, %cst_11 [1] : vector<16x32xf32> to vector<16xf32>
    %15 = vector.shape_cast %14 : vector<16xf32> to vector<16x1xf32>
    %cst_12 = arith.constant 3.200000e+01 : f32
    %16 = vector.broadcast %cst_12 : f32 to vector<16x1xf32>
    %17 = arith.divf %15, %16 : vector<16x1xf32>
    %18 = vector.broadcast %17 : vector<16x1xf32> to vector<16x32xf32>
    %19 = arith.subf %11, %18 : vector<16x32xf32>
    %20 = arith.mulf %19, %19 : vector<16x32xf32>
    %cst_13 = arith.constant dense<0.000000e+00> : vector<16xf32>
    %21 = vector.multi_reduction <add>, %20, %cst_13 [1] : vector<16x32xf32> to vector<16xf32>
    %22 = vector.shape_cast %21 : vector<16xf32> to vector<16x1xf32>
    %cst_14 = arith.constant 3.200000e+01 : f32
    %23 = vector.broadcast %cst_14 : f32 to vector<16x1xf32>
    %24 = arith.divf %22, %23 : vector<16x1xf32>
    %25 = vector.broadcast %17 : vector<16x1xf32> to vector<16x32xf32>
    %26 = arith.subf %11, %25 : vector<16x32xf32>
    %cst_15 = arith.constant 9.99999996E-13 : f32
    %27 = vector.broadcast %cst_15 : f32 to vector<16x1xf32>
    %28 = arith.addf %24, %27 : vector<16x1xf32>
    %29 = math.rsqrt %28 : vector<16x1xf32>
    %30 = vector.broadcast %29 : vector<16x1xf32> to vector<16x32xf32>
    %31 = arith.mulf %26, %30 : vector<16x32xf32>
    %32 = vector.broadcast %12 : vector<1x32xf32> to vector<16x32xf32>
    %33 = arith.mulf %31, %32 : vector<16x32xf32>
    %34 = vector.broadcast %13 : vector<1x32xf32> to vector<16x32xf32>
    %35 = arith.addf %33, %34 : vector<16x32xf32>
    %36 = arith.truncf %35 : vector<16x32xf32> to vector<16x32xbf16>
    %37 = vector.extract_strided_slice %36 {offsets = [0, 0], sizes = [8, 32], strides = [1, 1]} : vector<16x32xbf16> to vector<8x32xbf16>
    %38 = vector.shape_cast %37 : vector<8x32xbf16> to vector<1x8x32xbf16>
    %39 = vector.shape_cast %38 : vector<1x8x32xbf16> to vector<1x8x32xbf16>
    %40 = vector.broadcast %39 : vector<1x8x32xbf16> to vector<2x8x32xbf16>
    %c0_16 = arith.constant 0 : index
    %c0_17 = arith.constant 0 : index
    %c0_18 = arith.constant 0 : index
    %c0_19 = arith.constant 0 : index
    %41 = vector.load %arg6[%c0_16, %c0_17, %c0_18, %c0_19] : memref<2x2x32x16xbf16, #tpu.memory_space<vmem>>, vector<1x2x32x16xbf16>
    %42 = vector.shape_cast %41 : vector<1x2x32x16xbf16> to vector<2x32x16xbf16>
    %cst_20 = arith.constant dense<0.000000e+00> : vector<2x8x16xf32>
    %43 = tpu.matmul %40, %42, %cst_20 {dimension_numbers = #tpu.dot_dimension_numbers<[2], [1], [1], [2], [0, 0, 0, 1, 1, 2], [0], [0]>} : vector<2x8x32xbf16>, vector<2x32x16xbf16>, vector<2x8x16xf32> -> vector<2x8x16xf32>
    %c0_21 = arith.constant 0 : index
    %c0_22 = arith.constant 0 : index
    %c0_23 = arith.constant 0 : index
    %c0_24 = arith.constant 0 : index
    %44 = vector.load %arg7[%c0_21, %c0_22, %c0_23, %c0_24] : memref<2x2x1x16xf32, #tpu.memory_space<vmem>>, vector<1x2x1x16xf32>
    %45 = vector.shape_cast %44 : vector<1x2x1x16xf32> to vector<2x1x16xf32>
    %46 = vector.broadcast %45 : vector<2x1x16xf32> to vector<2x8x16xf32>
    %47 = arith.addf %43, %46 : vector<2x8x16xf32>
    %c0_25 = arith.constant 0 : index
    %c0_26 = arith.constant 0 : index
    %c0_27 = arith.constant 0 : index
    %c0_28 = arith.constant 0 : index
    %48 = vector.load %arg8[%c0_25, %c0_26, %c0_27, %c0_28] : memref<2x2x16x32xbf16, #tpu.memory_space<vmem>>, vector<1x2x16x32xbf16>
    %49 = vector.shape_cast %48 : vector<1x2x16x32xbf16> to vector<2x16x32xbf16>
    %cst_29 = arith.constant dense<0.000000e+00> : vector<2x16x8xf32>
    %50 = tpu.matmul %49, %40, %cst_29 {dimension_numbers = #tpu.dot_dimension_numbers<[2], [2], [1], [1], [0, 0, 0, 1, 1, 1], [0], [0]>} : vector<2x16x32xbf16>, vector<2x8x32xbf16>, vector<2x16x8xf32> -> vector<2x16x8xf32>
    %c0_30 = arith.constant 0 : index
    %c0_31 = arith.constant 0 : index
    %c0_32 = arith.constant 0 : index
    %c0_33 = arith.constant 0 : index
    %51 = vector.load %arg9[%c0_30, %c0_31, %c0_32, %c0_33] : memref<2x2x16x1xf32, #tpu.memory_space<vmem>>, vector<1x2x16x1xf32>
    %52 = vector.shape_cast %51 : vector<1x2x16x1xf32> to vector<2x16x1xf32>
    %53 = vector.broadcast %52 : vector<2x16x1xf32> to vector<2x16x8xf32>
    %54 = arith.addf %50, %53 : vector<2x16x8xf32>
    %c0_34 = arith.constant 0 : index
    %c0_35 = arith.constant 0 : index
    %c0_36 = arith.constant 0 : index
    %c0_37 = arith.constant 0 : index
    %55 = vector.load %arg10[%c0_34, %c0_35, %c0_36, %c0_37] : memref<2x2x32x16xbf16, #tpu.memory_space<vmem>>, vector<1x2x32x16xbf16>
    %56 = vector.shape_cast %55 : vector<1x2x32x16xbf16> to vector<2x32x16xbf16>
    %cst_38 = arith.constant dense<0.000000e+00> : vector<2x8x16xf32>
    %57 = tpu.matmul %40, %56, %cst_38 {dimension_numbers = #tpu.dot_dimension_numbers<[2], [1], [1], [2], [0, 0, 0, 1, 1, 2], [0], [0]>} : vector<2x8x32xbf16>, vector<2x32x16xbf16>, vector<2x8x16xf32> -> vector<2x8x16xf32>
    %c0_39 = arith.constant 0 : index
    %c0_40 = arith.constant 0 : index
    %c0_41 = arith.constant 0 : index
    %c0_42 = arith.constant 0 : index
    %58 = vector.load %arg11[%c0_39, %c0_40, %c0_41, %c0_42] : memref<2x2x1x16xf32, #tpu.memory_space<vmem>>, vector<1x2x1x16xf32>
    %59 = vector.shape_cast %58 : vector<1x2x1x16xf32> to vector<2x1x16xf32>
    %60 = vector.broadcast %59 : vector<2x1x16xf32> to vector<2x8x16xf32>
    %61 = arith.addf %57, %60 : vector<2x8x16xf32>
    %62 = arith.truncf %47 : vector<2x8x16xf32> to vector<2x8x16xbf16>
    %63 = arith.truncf %54 : vector<2x16x8xf32> to vector<2x16x8xbf16>
    %cst_43 = arith.constant dense<0.000000e+00> : vector<2x8x8xf32>
    %64 = tpu.matmul %62, %63, %cst_43 {dimension_numbers = #tpu.dot_dimension_numbers<[2], [1], [1], [2], [0, 0, 0, 1, 1, 2], [0], [0]>} : vector<2x8x16xbf16>, vector<2x16x8xbf16>, vector<2x8x8xf32> -> vector<2x8x8xf32>
    %cst_44 = arith.constant dense<0xFF800000> : vector<2x8xf32>
    %65 = vector.multi_reduction <maximumf>, %64, %cst_44 [2] : vector<2x8x8xf32> to vector<2x8xf32>
    %66 = vector.shape_cast %65 : vector<2x8xf32> to vector<2x8x1xf32>
    %67 = vector.broadcast %66 : vector<2x8x1xf32> to vector<2x8x8xf32>
    %68 = arith.subf %64, %67 : vector<2x8x8xf32>
    %69 = math.exp %68 : vector<2x8x8xf32>
    %cst_45 = arith.constant dense<0.000000e+00> : vector<2x8xf32>
    %70 = vector.multi_reduction <add>, %69, %cst_45 [2] : vector<2x8x8xf32> to vector<2x8xf32>
    %71 = vector.shape_cast %70 : vector<2x8xf32> to vector<2x8x1xf32>
    %72 = tpu.reciprocal %71 {approx = true} : vector<2x8x1xf32> -> vector<2x8x1xf32>
    %73 = vector.broadcast %72 : vector<2x8x1xf32> to vector<2x8x8xf32>
    %74 = arith.mulf %69, %73 : vector<2x8x8xf32>
    %75 = arith.truncf %74 : vector<2x8x8xf32> to vector<2x8x8xbf16>
    %76 = arith.truncf %61 : vector<2x8x16xf32> to vector<2x8x16xbf16>
    %cst_46 = arith.constant dense<0.000000e+00> : vector<2x8x16xf32>
    %77 = tpu.matmul %75, %76, %cst_46 {dimension_numbers = #tpu.dot_dimension_numbers<[2], [1], [1], [2], [0, 0, 0, 1, 1, 2], [0], [0]>} : vector<2x8x8xbf16>, vector<2x8x16xbf16>, vector<2x8x16xf32> -> vector<2x8x16xf32>
    %78 = arith.truncf %77 : vector<2x8x16xf32> to vector<2x8x16xbf16>
    %c0_47 = arith.constant 0 : index
    %c0_48 = arith.constant 0 : index
    %c0_49 = arith.constant 0 : index
    %c0_50 = arith.constant 0 : index
    %79 = vector.load %arg12[%c0_47, %c0_48, %c0_49, %c0_50] : memref<2x2x16x32xbf16, #tpu.memory_space<vmem>>, vector<1x2x16x32xbf16>
    %80 = vector.shape_cast %79 : vector<1x2x16x32xbf16> to vector<2x16x32xbf16>
    %cst_51 = arith.constant dense<0.000000e+00> : vector<2x8x32xf32>
    %81 = tpu.matmul %78, %80, %cst_51 {dimension_numbers = #tpu.dot_dimension_numbers<[2], [1], [1], [2], [0, 0, 0, 1, 1, 2], [0], [0]>} : vector<2x8x16xbf16>, vector<2x16x32xbf16>, vector<2x8x32xf32> -> vector<2x8x32xf32>
    %cst_52 = arith.constant dense<0.000000e+00> : vector<8x32xf32>
    %82 = vector.multi_reduction <add>, %81, %cst_52 [0] : vector<2x8x32xf32> to vector<8x32xf32>
    %c0_53 = arith.constant 0 : index
    %c0_54 = arith.constant 0 : index
    %83 = vector.load %arg28[%c0_53, %c0_54] : memref<16x32xf32, #tpu.memory_space<vmem>>, vector<8x32xf32>
    tpu.vector_store %arg28[%c0_53, %c0_54], %82 {strides = array<i32>} : memref<16x32xf32, #tpu.memory_space<vmem>>, vector<8x32xf32>,
    %84 = vector.extract_strided_slice %36 {offsets = [8, 0], sizes = [8, 32], strides = [1, 1]} : vector<16x32xbf16> to vector<8x32xbf16>
    %85 = vector.shape_cast %84 : vector<8x32xbf16> to vector<1x8x32xbf16>
    %86 = vector.shape_cast %85 : vector<1x8x32xbf16> to vector<1x8x32xbf16>
    %87 = vector.broadcast %86 : vector<1x8x32xbf16> to vector<2x8x32xbf16>
    %c0_55 = arith.constant 0 : index
    %c0_56 = arith.constant 0 : index
    %c0_57 = arith.constant 0 : index
    %c0_58 = arith.constant 0 : index
    %88 = vector.load %arg6[%c0_55, %c0_56, %c0_57, %c0_58] : memref<2x2x32x16xbf16, #tpu.memory_space<vmem>>, vector<1x2x32x16xbf16>
    %89 = vector.shape_cast %88 : vector<1x2x32x16xbf16> to vector<2x32x16xbf16>
    %cst_59 = arith.constant dense<0.000000e+00> : vector<2x8x16xf32>
    %90 = tpu.matmul %87, %89, %cst_59 {dimension_numbers = #tpu.dot_dimension_numbers<[2], [1], [1], [2], [0, 0, 0, 1, 1, 2], [0], [0]>} : vector<2x8x32xbf16>, vector<2x32x16xbf16>, vector<2x8x16xf32> -> vector<2x8x16xf32>
    %c0_60 = arith.constant 0 : index
    %c0_61 = arith.constant 0 : index
    %c0_62 = arith.constant 0 : index
    %c0_63 = arith.constant 0 : index
    %91 = vector.load %arg7[%c0_60, %c0_61, %c0_62, %c0_63] : memref<2x2x1x16xf32, #tpu.memory_space<vmem>>, vector<1x2x1x16xf32>
    %92 = vector.shape_cast %91 : vector<1x2x1x16xf32> to vector<2x1x16xf32>
    %93 = vector.broadcast %92 : vector<2x1x16xf32> to vector<2x8x16xf32>
    %94 = arith.addf %90, %93 : vector<2x8x16xf32>
    %c0_64 = arith.constant 0 : index
    %c0_65 = arith.constant 0 : index
    %c0_66 = arith.constant 0 : index
    %c0_67 = arith.constant 0 : index
    %95 = vector.load %arg8[%c0_64, %c0_65, %c0_66, %c0_67] : memref<2x2x16x32xbf16, #tpu.memory_space<vmem>>, vector<1x2x16x32xbf16>
    %96 = vector.shape_cast %95 : vector<1x2x16x32xbf16> to vector<2x16x32xbf16>
    %cst_68 = arith.constant dense<0.000000e+00> : vector<2x16x8xf32>
    %97 = tpu.matmul %96, %87, %cst_68 {dimension_numbers = #tpu.dot_dimension_numbers<[2], [2], [1], [1], [0, 0, 0, 1, 1, 1], [0], [0]>} : vector<2x16x32xbf16>, vector<2x8x32xbf16>, vector<2x16x8xf32> -> vector<2x16x8xf32>
    %c0_69 = arith.constant 0 : index
    %c0_70 = arith.constant 0 : index
    %c0_71 = arith.constant 0 : index
    %c0_72 = arith.constant 0 : index
    %98 = vector.load %arg9[%c0_69, %c0_70, %c0_71, %c0_72] : memref<2x2x16x1xf32, #tpu.memory_space<vmem>>, vector<1x2x16x1xf32>
    %99 = vector.shape_cast %98 : vector<1x2x16x1xf32> to vector<2x16x1xf32>
    %100 = vector.broadcast %99 : vector<2x16x1xf32> to vector<2x16x8xf32>
    %101 = arith.addf %97, %100 : vector<2x16x8xf32>
    %c0_73 = arith.constant 0 : index
    %c0_74 = arith.constant 0 : index
    %c0_75 = arith.constant 0 : index
    %c0_76 = arith.constant 0 : index
    %102 = vector.load %arg10[%c0_73, %c0_74, %c0_75, %c0_76] : memref<2x2x32x16xbf16, #tpu.memory_space<vmem>>, vector<1x2x32x16xbf16>
    %103 = vector.shape_cast %102 : vector<1x2x32x16xbf16> to vector<2x32x16xbf16>
    %cst_77 = arith.constant dense<0.000000e+00> : vector<2x8x16xf32>
    %104 = tpu.matmul %87, %103, %cst_77 {dimension_numbers = #tpu.dot_dimension_numbers<[2], [1], [1], [2], [0, 0, 0, 1, 1, 2], [0], [0]>} : vector<2x8x32xbf16>, vector<2x32x16xbf16>, vector<2x8x16xf32> -> vector<2x8x16xf32>
    %c0_78 = arith.constant 0 : index
    %c0_79 = arith.constant 0 : index
    %c0_80 = arith.constant 0 : index
    %c0_81 = arith.constant 0 : index
    %105 = vector.load %arg11[%c0_78, %c0_79, %c0_80, %c0_81] : memref<2x2x1x16xf32, #tpu.memory_space<vmem>>, vector<1x2x1x16xf32>
    %106 = vector.shape_cast %105 : vector<1x2x1x16xf32> to vector<2x1x16xf32>
    %107 = vector.broadcast %106 : vector<2x1x16xf32> to vector<2x8x16xf32>
    %108 = arith.addf %104, %107 : vector<2x8x16xf32>
    %109 = arith.truncf %94 : vector<2x8x16xf32> to vector<2x8x16xbf16>
    %110 = arith.truncf %101 : vector<2x16x8xf32> to vector<2x16x8xbf16>
    %cst_82 = arith.constant dense<0.000000e+00> : vector<2x8x8xf32>
    %111 = tpu.matmul %109, %110, %cst_82 {dimension_numbers = #tpu.dot_dimension_numbers<[2], [1], [1], [2], [0, 0, 0, 1, 1, 2], [0], [0]>} : vector<2x8x16xbf16>, vector<2x16x8xbf16>, vector<2x8x8xf32> -> vector<2x8x8xf32>
    %cst_83 = arith.constant dense<0xFF800000> : vector<2x8xf32>
    %112 = vector.multi_reduction <maximumf>, %111, %cst_83 [2] : vector<2x8x8xf32> to vector<2x8xf32>
    %113 = vector.shape_cast %112 : vector<2x8xf32> to vector<2x8x1xf32>
    %114 = vector.broadcast %113 : vector<2x8x1xf32> to vector<2x8x8xf32>
    %115 = arith.subf %111, %114 : vector<2x8x8xf32>
    %116 = math.exp %115 : vector<2x8x8xf32>
    %cst_84 = arith.constant dense<0.000000e+00> : vector<2x8xf32>
    %117 = vector.multi_reduction <add>, %116, %cst_84 [2] : vector<2x8x8xf32> to vector<2x8xf32>
    %118 = vector.shape_cast %117 : vector<2x8xf32> to vector<2x8x1xf32>
    %119 = tpu.reciprocal %118 {approx = true} : vector<2x8x1xf32> -> vector<2x8x1xf32>
    %120 = vector.broadcast %119 : vector<2x8x1xf32> to vector<2x8x8xf32>
    %121 = arith.mulf %116, %120 : vector<2x8x8xf32>
    %122 = arith.truncf %121 : vector<2x8x8xf32> to vector<2x8x8xbf16>
    %123 = arith.truncf %108 : vector<2x8x16xf32> to vector<2x8x16xbf16>
    %cst_85 = arith.constant dense<0.000000e+00> : vector<2x8x16xf32>
    %124 = tpu.matmul %122, %123, %cst_85 {dimension_numbers = #tpu.dot_dimension_numbers<[2], [1], [1], [2], [0, 0, 0, 1, 1, 2], [0], [0]>} : vector<2x8x8xbf16>, vector<2x8x16xbf16>, vector<2x8x16xf32> -> vector<2x8x16xf32>
    %125 = arith.truncf %124 : vector<2x8x16xf32> to vector<2x8x16xbf16>
    %c0_86 = arith.constant 0 : index
    %c0_87 = arith.constant 0 : index
    %c0_88 = arith.constant 0 : index
    %c0_89 = arith.constant 0 : index
    %126 = vector.load %arg12[%c0_86, %c0_87, %c0_88, %c0_89] : memref<2x2x16x32xbf16, #tpu.memory_space<vmem>>, vector<1x2x16x32xbf16>
    %127 = vector.shape_cast %126 : vector<1x2x16x32xbf16> to vector<2x16x32xbf16>
    %cst_90 = arith.constant dense<0.000000e+00> : vector<2x8x32xf32>
    %128 = tpu.matmul %125, %127, %cst_90 {dimension_numbers = #tpu.dot_dimension_numbers<[2], [1], [1], [2], [0, 0, 0, 1, 1, 2], [0], [0]>} : vector<2x8x16xbf16>, vector<2x16x32xbf16>, vector<2x8x32xf32> -> vector<2x8x32xf32>
    %cst_91 = arith.constant dense<0.000000e+00> : vector<8x32xf32>
    %129 = vector.multi_reduction <add>, %128, %cst_91 [0] : vector<2x8x32xf32> to vector<8x32xf32>
    %c8 = arith.constant 8 : index
    %c0_92 = arith.constant 0 : index
    %130 = vector.load %arg28[%c8, %c0_92] : memref<16x32xf32, #tpu.memory_space<vmem>>, vector<8x32xf32>
    tpu.vector_store %arg28[%c8, %c0_92], %129 {strides = array<i32>} : memref<16x32xf32, #tpu.memory_space<vmem>>, vector<8x32xf32>,
    %c0_93 = arith.constant 0 : index
    %c0_94 = arith.constant 0 : index
    %131 = vector.load %arg28[%c0_93, %c0_94] : memref<16x32xf32, #tpu.memory_space<vmem>>, vector<16x32xf32>
    %c0_95 = arith.constant 0 : index
    %c0_96 = arith.constant 0 : index
    %c0_97 = arith.constant 0 : index
    %132 = vector.load %arg13[%c0_95, %c0_96, %c0_97] : memref<2x1x32xf32, #tpu.memory_space<vmem>>, vector<1x1x32xf32>
    %133 = vector.shape_cast %132 : vector<1x1x32xf32> to vector<1x32xf32>
    %134 = vector.broadcast %133 : vector<1x32xf32> to vector<16x32xf32>
    %135 = arith.addf %131, %134 : vector<16x32xf32>
    %136 = arith.addf %135, %35 : vector<16x32xf32>
    %c0_98 = arith.constant 0 : index
    %c0_99 = arith.constant 0 : index
    %c0_100 = arith.constant 0 : index
    %137 = vector.load %arg14[%c0_98, %c0_99, %c0_100] : memref<2x1x32xf32, #tpu.memory_space<vmem>>, vector<1x1x32xf32>
    %138 = vector.shape_cast %137 : vector<1x1x32xf32> to vector<1x32xf32>
    %c0_101 = arith.constant 0 : index
    %c0_102 = arith.constant 0 : index
    %c0_103 = arith.constant 0 : index
    %139 = vector.load %arg15[%c0_101, %c0_102, %c0_103] : memref<2x1x32xf32, #tpu.memory_space<vmem>>, vector<1x1x32xf32>
    %140 = vector.shape_cast %139 : vector<1x1x32xf32> to vector<1x32xf32>
    %cst_104 = arith.constant dense<0.000000e+00> : vector<16xf32>
    %141 = vector.multi_reduction <add>, %136, %cst_104 [1] : vector<16x32xf32> to vector<16xf32>
    %142 = vector.shape_cast %141 : vector<16xf32> to vector<16x1xf32>
    %cst_105 = arith.constant 3.200000e+01 : f32
    %143 = vector.broadcast %cst_105 : f32 to vector<16x1xf32>
    %144 = arith.divf %142, %143 : vector<16x1xf32>
    %145 = vector.broadcast %144 : vector<16x1xf32> to vector<16x32xf32>
    %146 = arith.subf %136, %145 : vector<16x32xf32>
    %147 = arith.mulf %146, %146 : vector<16x32xf32>
    %cst_106 = arith.constant dense<0.000000e+00> : vector<16xf32>
    %148 = vector.multi_reduction <add>, %147, %cst_106 [1] : vector<16x32xf32> to vector<16xf32>
    %149 = vector.shape_cast %148 : vector<16xf32> to vector<16x1xf32>
    %cst_107 = arith.constant 3.200000e+01 : f32
    %150 = vector.broadcast %cst_107 : f32 to vector<16x1xf32>
    %151 = arith.divf %149, %150 : vector<16x1xf32>
    %152 = vector.broadcast %144 : vector<16x1xf32> to vector<16x32xf32>
    %153 = arith.subf %136, %152 : vector<16x32xf32>
    %cst_108 = arith.constant 9.99999996E-13 : f32
    %154 = vector.broadcast %cst_108 : f32 to vector<16x1xf32>
    %155 = arith.addf %151, %154 : vector<16x1xf32>
    %156 = math.rsqrt %155 : vector<16x1xf32>
    %157 = vector.broadcast %156 : vector<16x1xf32> to vector<16x32xf32>
    %158 = arith.mulf %153, %157 : vector<16x32xf32>
    %159 = vector.broadcast %138 : vector<1x32xf32> to vector<16x32xf32>
    %160 = arith.mulf %158, %159 : vector<16x32xf32>
    %161 = vector.broadcast %140 : vector<1x32xf32> to vector<16x32xf32>
    %162 = arith.addf %160, %161 : vector<16x32xf32>
    %163 = arith.truncf %162 : vector<16x32xf32> to vector<16x32xbf16>
    %c0_109 = arith.constant 0 : index
    %c0_110 = arith.constant 0 : index
    %c0_111 = arith.constant 0 : index
    %164 = vector.load %arg16[%c0_109, %c0_110, %c0_111] : memref<2x32x64xbf16, #tpu.memory_space<vmem>>, vector<1x32x64xbf16>
    %165 = vector.shape_cast %164 : vector<1x32x64xbf16> to vector<32x64xbf16>
    %cst_112 = arith.constant dense<0.000000e+00> : vector<16x64xf32>
    %166 = tpu.matmul %163, %165, %cst_112 {dimension_numbers = #tpu.dot_dimension_numbers<[1], [0], [0], [1], [0, 0, 1, 1], [], []>} : vector<16x32xbf16>, vector<32x64xbf16>, vector<16x64xf32> -> vector<16x64xf32>
    %c0_113 = arith.constant 0 : index
    %c0_114 = arith.constant 0 : index
    %c0_115 = arith.constant 0 : index
    %167 = vector.load %arg17[%c0_113, %c0_114, %c0_115] : memref<2x1x64xf32, #tpu.memory_space<vmem>>, vector<1x1x64xf32>
    %168 = vector.shape_cast %167 : vector<1x1x64xf32> to vector<1x64xf32>
    %169 = vector.broadcast %168 : vector<1x64xf32> to vector<16x64xf32>
    %170 = arith.addf %166, %169 : vector<16x64xf32>
    %cst_116 = arith.constant 5.000000e-01 : f32
    %171 = vector.broadcast %cst_116 : f32 to vector<16x64xf32>
    %172 = arith.mulf %171, %170 : vector<16x64xf32>
    %cst_117 = arith.constant 4.471500e-02 : f32
    %173 = vector.broadcast %cst_117 : f32 to vector<16x64xf32>
    %174 = arith.mulf %173, %170 : vector<16x64xf32>
    %175 = arith.mulf %174, %170 : vector<16x64xf32>
    %176 = arith.mulf %175, %170 : vector<16x64xf32>
    %177 = arith.addf %170, %176 : vector<16x64xf32>
    %cst_118 = arith.constant 0.797884583 : f32
    %178 = vector.broadcast %cst_118 : f32 to vector<16x64xf32>
    %179 = arith.mulf %178, %177 : vector<16x64xf32>
    %180 = math.tanh %179 : vector<16x64xf32>
    %cst_119 = arith.constant 1.000000e+00 : f32
    %181 = vector.broadcast %cst_119 : f32 to vector<16x64xf32>
    %182 = arith.addf %181, %180 : vector<16x64xf32>
    %183 = arith.mulf %172, %182 : vector<16x64xf32>
    %184 = arith.truncf %183 : vector<16x64xf32> to vector<16x64xbf16>
    %c0_120 = arith.constant 0 : index
    %c0_121 = arith.constant 0 : index
    %c0_122 = arith.constant 0 : index
    %185 = vector.load %arg18[%c0_120, %c0_121, %c0_122] : memref<2x64x32xbf16, #tpu.memory_space<vmem>>, vector<1x64x32xbf16>
    %186 = vector.shape_cast %185 : vector<1x64x32xbf16> to vector<64x32xbf16>
    %cst_123 = arith.constant dense<0.000000e+00> : vector<16x32xf32>
    %187 = tpu.matmul %184, %186, %cst_123 {dimension_numbers = #tpu.dot_dimension_numbers<[1], [0], [0], [1], [0, 0, 1, 1], [], []>} : vector<16x64xbf16>, vector<64x32xbf16>, vector<16x32xf32> -> vector<16x32xf32>
    %c0_124 = arith.constant 0 : index
    %c0_125 = arith.constant 0 : index
    %c0_126 = arith.constant 0 : index
    %188 = vector.load %arg19[%c0_124, %c0_125, %c0_126] : memref<2x1x32xf32, #tpu.memory_space<vmem>>, vector<1x1x32xf32>
    %189 = vector.shape_cast %188 : vector<1x1x32xf32> to vector<1x32xf32>
    %190 = vector.broadcast %189 : vector<1x32xf32> to vector<16x32xf32>
    %191 = arith.addf %187, %190 : vector<16x32xf32>
    %192 = arith.addf %191, %162 : vector<16x32xf32>
    %c0_127 = arith.constant 0 : index
    %c0_128 = arith.constant 0 : index
    %c0_129 = arith.constant 0 : index
    %193 = vector.load %arg20[%c0_127, %c0_128, %c0_129] : memref<2x1x32xf32, #tpu.memory_space<vmem>>, vector<1x1x32xf32>
    %194 = vector.shape_cast %193 : vector<1x1x32xf32> to vector<1x32xf32>
    %c0_130 = arith.constant 0 : index
    %c0_131 = arith.constant 0 : index
    %c0_132 = arith.constant 0 : index
    %195 = vector.load %arg21[%c0_130, %c0_131, %c0_132] : memref<2x1x32xf32, #tpu.memory_space<vmem>>, vector<1x1x32xf32>
    %196 = vector.shape_cast %195 : vector<1x1x32xf32> to vector<1x32xf32>
    %cst_133 = arith.constant dense<0.000000e+00> : vector<16xf32>
    %197 = vector.multi_reduction <add>, %192, %cst_133 [1] : vector<16x32xf32> to vector<16xf32>
    %198 = vector.shape_cast %197 : vector<16xf32> to vector<16x1xf32>
    %cst_134 = arith.constant 3.200000e+01 : f32
    %199 = vector.broadcast %cst_134 : f32 to vector<16x1xf32>
    %200 = arith.divf %198, %199 : vector<16x1xf32>
    %201 = vector.broadcast %200 : vector<16x1xf32> to vector<16x32xf32>
    %202 = arith.subf %192, %201 : vector<16x32xf32>
    %203 = arith.mulf %202, %202 : vector<16x32xf32>
    %cst_135 = arith.constant dense<0.000000e+00> : vector<16xf32>
    %204 = vector.multi_reduction <add>, %203, %cst_135 [1] : vector<16x32xf32> to vector<16xf32>
    %205 = vector.shape_cast %204 : vector<16xf32> to vector<16x1xf32>
    %cst_136 = arith.constant 3.200000e+01 : f32
    %206 = vector.broadcast %cst_136 : f32 to vector<16x1xf32>
    %207 = arith.divf %205, %206 : vector<16x1xf32>
    %208 = vector.broadcast %200 : vector<16x1xf32> to vector<16x32xf32>
    %209 = arith.subf %192, %208 : vector<16x32xf32>
    %cst_137 = arith.constant 9.99999996E-13 : f32
    %210 = vector.broadcast %cst_137 : f32 to vector<16x1xf32>
    %211 = arith.addf %207, %210 : vector<16x1xf32>
    %212 = math.rsqrt %211 : vector<16x1xf32>
    %213 = vector.broadcast %212 : vector<16x1xf32> to vector<16x32xf32>
    %214 = arith.mulf %209, %213 : vector<16x32xf32>
    %215 = vector.broadcast %194 : vector<1x32xf32> to vector<16x32xf32>
    %216 = arith.mulf %214, %215 : vector<16x32xf32>
    %217 = vector.broadcast %196 : vector<1x32xf32> to vector<16x32xf32>
    %218 = arith.addf %216, %217 : vector<16x32xf32>
    %219 = arith.truncf %218 : vector<16x32xf32> to vector<16x32xbf16>
    %220 = vector.extract_strided_slice %219 {offsets = [0, 0], sizes = [8, 32], strides = [1, 1]} : vector<16x32xbf16> to vector<8x32xbf16>
    %221 = vector.shape_cast %220 : vector<8x32xbf16> to vector<1x8x32xbf16>
    %222 = vector.shape_cast %221 : vector<1x8x32xbf16> to vector<1x8x32xbf16>
    %223 = vector.broadcast %222 : vector<1x8x32xbf16> to vector<2x8x32xbf16>
    %c1 = arith.constant 1 : index
    %c0_138 = arith.constant 0 : index
    %c0_139 = arith.constant 0 : index
    %c0_140 = arith.constant 0 : index
    %224 = vector.load %arg6[%c1, %c0_138, %c0_139, %c0_140] : memref<2x2x32x16xbf16, #tpu.memory_space<vmem>>, vector<1x2x32x16xbf16>
    %225 = vector.shape_cast %224 : vector<1x2x32x16xbf16> to vector<2x32x16xbf16>
    %cst_141 = arith.constant dense<0.000000e+00> : vector<2x8x16xf32>
    %226 = tpu.matmul %223, %225, %cst_141 {dimension_numbers = #tpu.dot_dimension_numbers<[2], [1], [1], [2], [0, 0, 0, 1, 1, 2], [0], [0]>} : vector<2x8x32xbf16>, vector<2x32x16xbf16>, vector<2x8x16xf32> -> vector<2x8x16xf32>
    %c1_142 = arith.constant 1 : index
    %c0_143 = arith.constant 0 : index
    %c0_144 = arith.constant 0 : index
    %c0_145 = arith.constant 0 : index
    %227 = vector.load %arg7[%c1_142, %c0_143, %c0_144, %c0_145] : memref<2x2x1x16xf32, #tpu.memory_space<vmem>>, vector<1x2x1x16xf32>
    %228 = vector.shape_cast %227 : vector<1x2x1x16xf32> to vector<2x1x16xf32>
    %229 = vector.broadcast %228 : vector<2x1x16xf32> to vector<2x8x16xf32>
    %230 = arith.addf %226, %229 : vector<2x8x16xf32>
    %c1_146 = arith.constant 1 : index
    %c0_147 = arith.constant 0 : index
    %c0_148 = arith.constant 0 : index
    %c0_149 = arith.constant 0 : index
    %231 = vector.load %arg8[%c1_146, %c0_147, %c0_148, %c0_149] : memref<2x2x16x32xbf16, #tpu.memory_space<vmem>>, vector<1x2x16x32xbf16>
    %232 = vector.shape_cast %231 : vector<1x2x16x32xbf16> to vector<2x16x32xbf16>
    %cst_150 = arith.constant dense<0.000000e+00> : vector<2x16x8xf32>
    %233 = tpu.matmul %232, %223, %cst_150 {dimension_numbers = #tpu.dot_dimension_numbers<[2], [2], [1], [1], [0, 0, 0, 1, 1, 1], [0], [0]>} : vector<2x16x32xbf16>, vector<2x8x32xbf16>, vector<2x16x8xf32> -> vector<2x16x8xf32>
    %c1_151 = arith.constant 1 : index
    %c0_152 = arith.constant 0 : index
    %c0_153 = arith.constant 0 : index
    %c0_154 = arith.constant 0 : index
    %234 = vector.load %arg9[%c1_151, %c0_152, %c0_153, %c0_154] : memref<2x2x16x1xf32, #tpu.memory_space<vmem>>, vector<1x2x16x1xf32>
    %235 = vector.shape_cast %234 : vector<1x2x16x1xf32> to vector<2x16x1xf32>
    %236 = vector.broadcast %235 : vector<2x16x1xf32> to vector<2x16x8xf32>
    %237 = arith.addf %233, %236 : vector<2x16x8xf32>
    %c1_155 = arith.constant 1 : index
    %c0_156 = arith.constant 0 : index
    %c0_157 = arith.constant 0 : index
    %c0_158 = arith.constant 0 : index
    %238 = vector.load %arg10[%c1_155, %c0_156, %c0_157, %c0_158] : memref<2x2x32x16xbf16, #tpu.memory_space<vmem>>, vector<1x2x32x16xbf16>
    %239 = vector.shape_cast %238 : vector<1x2x32x16xbf16> to vector<2x32x16xbf16>
    %cst_159 = arith.constant dense<0.000000e+00> : vector<2x8x16xf32>
    %240 = tpu.matmul %223, %239, %cst_159 {dimension_numbers = #tpu.dot_dimension_numbers<[2], [1], [1], [2], [0, 0, 0, 1, 1, 2], [0], [0]>} : vector<2x8x32xbf16>, vector<2x32x16xbf16>, vector<2x8x16xf32> -> vector<2x8x16xf32>
    %c1_160 = arith.constant 1 : index
    %c0_161 = arith.constant 0 : index
    %c0_162 = arith.constant 0 : index
    %c0_163 = arith.constant 0 : index
    %241 = vector.load %arg11[%c1_160, %c0_161, %c0_162, %c0_163] : memref<2x2x1x16xf32, #tpu.memory_space<vmem>>, vector<1x2x1x16xf32>
    %242 = vector.shape_cast %241 : vector<1x2x1x16xf32> to vector<2x1x16xf32>
    %243 = vector.broadcast %242 : vector<2x1x16xf32> to vector<2x8x16xf32>
    %244 = arith.addf %240, %243 : vector<2x8x16xf32>
    %245 = arith.truncf %230 : vector<2x8x16xf32> to vector<2x8x16xbf16>
    %246 = arith.truncf %237 : vector<2x16x8xf32> to vector<2x16x8xbf16>
    %cst_164 = arith.constant dense<0.000000e+00> : vector<2x8x8xf32>
    %247 = tpu.matmul %245, %246, %cst_164 {dimension_numbers = #tpu.dot_dimension_numbers<[2], [1], [1], [2], [0, 0, 0, 1, 1, 2], [0], [0]>} : vector<2x8x16xbf16>, vector<2x16x8xbf16>, vector<2x8x8xf32> -> vector<2x8x8xf32>
    %cst_165 = arith.constant dense<0xFF800000> : vector<2x8xf32>
    %248 = vector.multi_reduction <maximumf>, %247, %cst_165 [2] : vector<2x8x8xf32> to vector<2x8xf32>
    %249 = vector.shape_cast %248 : vector<2x8xf32> to vector<2x8x1xf32>
    %250 = vector.broadcast %249 : vector<2x8x1xf32> to vector<2x8x8xf32>
    %251 = arith.subf %247, %250 : vector<2x8x8xf32>
    %252 = math.exp %251 : vector<2x8x8xf32>
    %cst_166 = arith.constant dense<0.000000e+00> : vector<2x8xf32>
    %253 = vector.multi_reduction <add>, %252, %cst_166 [2] : vector<2x8x8xf32> to vector<2x8xf32>
    %254 = vector.shape_cast %253 : vector<2x8xf32> to vector<2x8x1xf32>
    %255 = tpu.reciprocal %254 {approx = true} : vector<2x8x1xf32> -> vector<2x8x1xf32>
    %256 = vector.broadcast %255 : vector<2x8x1xf32> to vector<2x8x8xf32>
    %257 = arith.mulf %252, %256 : vector<2x8x8xf32>
    %258 = arith.truncf %257 : vector<2x8x8xf32> to vector<2x8x8xbf16>
    %259 = arith.truncf %244 : vector<2x8x16xf32> to vector<2x8x16xbf16>
    %cst_167 = arith.constant dense<0.000000e+00> : vector<2x8x16xf32>
    %260 = tpu.matmul %258, %259, %cst_167 {dimension_numbers = #tpu.dot_dimension_numbers<[2], [1], [1], [2], [0, 0, 0, 1, 1, 2], [0], [0]>} : vector<2x8x8xbf16>, vector<2x8x16xbf16>, vector<2x8x16xf32> -> vector<2x8x16xf32>
    %261 = arith.truncf %260 : vector<2x8x16xf32> to vector<2x8x16xbf16>
    %c1_168 = arith.constant 1 : index
    %c0_169 = arith.constant 0 : index
    %c0_170 = arith.constant 0 : index
    %c0_171 = arith.constant 0 : index
    %262 = vector.load %arg12[%c1_168, %c0_169, %c0_170, %c0_171] : memref<2x2x16x32xbf16, #tpu.memory_space<vmem>>, vector<1x2x16x32xbf16>
    %263 = vector.shape_cast %262 : vector<1x2x16x32xbf16> to vector<2x16x32xbf16>
    %cst_172 = arith.constant dense<0.000000e+00> : vector<2x8x32xf32>
    %264 = tpu.matmul %261, %263, %cst_172 {dimension_numbers = #tpu.dot_dimension_numbers<[2], [1], [1], [2], [0, 0, 0, 1, 1, 2], [0], [0]>} : vector<2x8x16xbf16>, vector<2x16x32xbf16>, vector<2x8x32xf32> -> vector<2x8x32xf32>
    %cst_173 = arith.constant dense<0.000000e+00> : vector<8x32xf32>
    %265 = vector.multi_reduction <add>, %264, %cst_173 [0] : vector<2x8x32xf32> to vector<8x32xf32>
    %c0_174 = arith.constant 0 : index
    %c0_175 = arith.constant 0 : index
    %266 = vector.load %arg28[%c0_174, %c0_175] : memref<16x32xf32, #tpu.memory_space<vmem>>, vector<8x32xf32>
    tpu.vector_store %arg28[%c0_174, %c0_175], %265 {strides = array<i32>} : memref<16x32xf32, #tpu.memory_space<vmem>>, vector<8x32xf32>,
    %267 = vector.extract_strided_slice %219 {offsets = [8, 0], sizes = [8, 32], strides = [1, 1]} : vector<16x32xbf16> to vector<8x32xbf16>
    %268 = vector.shape_cast %267 : vector<8x32xbf16> to vector<1x8x32xbf16>
    %269 = vector.shape_cast %268 : vector<1x8x32xbf16> to vector<1x8x32xbf16>
    %270 = vector.broadcast %269 : vector<1x8x32xbf16> to vector<2x8x32xbf16>
    %c1_176 = arith.constant 1 : index
    %c0_177 = arith.constant 0 : index
    %c0_178 = arith.constant 0 : index
    %c0_179 = arith.constant 0 : index
    %271 = vector.load %arg6[%c1_176, %c0_177, %c0_178, %c0_179] : memref<2x2x32x16xbf16, #tpu.memory_space<vmem>>, vector<1x2x32x16xbf16>
    %272 = vector.shape_cast %271 : vector<1x2x32x16xbf16> to vector<2x32x16xbf16>
    %cst_180 = arith.constant dense<0.000000e+00> : vector<2x8x16xf32>
    %273 = tpu.matmul %270, %272, %cst_180 {dimension_numbers = #tpu.dot_dimension_numbers<[2], [1], [1], [2], [0, 0, 0, 1, 1, 2], [0], [0]>} : vector<2x8x32xbf16>, vector<2x32x16xbf16>, vector<2x8x16xf32> -> vector<2x8x16xf32>
    %c1_181 = arith.constant 1 : index
    %c0_182 = arith.constant 0 : index
    %c0_183 = arith.constant 0 : index
    %c0_184 = arith.constant 0 : index
    %274 = vector.load %arg7[%c1_181, %c0_182, %c0_183, %c0_184] : memref<2x2x1x16xf32, #tpu.memory_space<vmem>>, vector<1x2x1x16xf32>
    %275 = vector.shape_cast %274 : vector<1x2x1x16xf32> to vector<2x1x16xf32>
    %276 = vector.broadcast %275 : vector<2x1x16xf32> to vector<2x8x16xf32>
    %277 = arith.addf %273, %276 : vector<2x8x16xf32>
    %c1_185 = arith.constant 1 : index
    %c0_186 = arith.constant 0 : index
    %c0_187 = arith.constant 0 : index
    %c0_188 = arith.constant 0 : index
    %278 = vector.load %arg8[%c1_185, %c0_186, %c0_187, %c0_188] : memref<2x2x16x32xbf16, #tpu.memory_space<vmem>>, vector<1x2x16x32xbf16>
    %279 = vector.shape_cast %278 : vector<1x2x16x32xbf16> to vector<2x16x32xbf16>
    %cst_189 = arith.constant dense<0.000000e+00> : vector<2x16x8xf32>
    %280 = tpu.matmul %279, %270, %cst_189 {dimension_numbers = #tpu.dot_dimension_numbers<[2], [2], [1], [1], [0, 0, 0, 1, 1, 1], [0], [0]>} : vector<2x16x32xbf16>, vector<2x8x32xbf16>, vector<2x16x8xf32> -> vector<2x16x8xf32>
    %c1_190 = arith.constant 1 : index
    %c0_191 = arith.constant 0 : index
    %c0_192 = arith.constant 0 : index
    %c0_193 = arith.constant 0 : index
    %281 = vector.load %arg9[%c1_190, %c0_191, %c0_192, %c0_193] : memref<2x2x16x1xf32, #tpu.memory_space<vmem>>, vector<1x2x16x1xf32>
    %282 = vector.shape_cast %281 : vector<1x2x16x1xf32> to vector<2x16x1xf32>
    %283 = vector.broadcast %282 : vector<2x16x1xf32> to vector<2x16x8xf32>
    %284 = arith.addf %280, %283 : vector<2x16x8xf32>
    %c1_194 = arith.constant 1 : index
    %c0_195 = arith.constant 0 : index
    %c0_196 = arith.constant 0 : index
    %c0_197 = arith.constant 0 : index
    %285 = vector.load %arg10[%c1_194, %c0_195, %c0_196, %c0_197] : memref<2x2x32x16xbf16, #tpu.memory_space<vmem>>, vector<1x2x32x16xbf16>
    %286 = vector.shape_cast %285 : vector<1x2x32x16xbf16> to vector<2x32x16xbf16>
    %cst_198 = arith.constant dense<0.000000e+00> : vector<2x8x16xf32>
    %287 = tpu.matmul %270, %286, %cst_198 {dimension_numbers = #tpu.dot_dimension_numbers<[2], [1], [1], [2], [0, 0, 0, 1, 1, 2], [0], [0]>} : vector<2x8x32xbf16>, vector<2x32x16xbf16>, vector<2x8x16xf32> -> vector<2x8x16xf32>
    %c1_199 = arith.constant 1 : index
    %c0_200 = arith.constant 0 : index
    %c0_201 = arith.constant 0 : index
    %c0_202 = arith.constant 0 : index
    %288 = vector.load %arg11[%c1_199, %c0_200, %c0_201, %c0_202] : memref<2x2x1x16xf32, #tpu.memory_space<vmem>>, vector<1x2x1x16xf32>
    %289 = vector.shape_cast %288 : vector<1x2x1x16xf32> to vector<2x1x16xf32>
    %290 = vector.broadcast %289 : vector<2x1x16xf32> to vector<2x8x16xf32>
    %291 = arith.addf %287, %290 : vector<2x8x16xf32>
    %292 = arith.truncf %277 : vector<2x8x16xf32> to vector<2x8x16xbf16>
    %293 = arith.truncf %284 : vector<2x16x8xf32> to vector<2x16x8xbf16>
    %cst_203 = arith.constant dense<0.000000e+00> : vector<2x8x8xf32>
    %294 = tpu.matmul %292, %293, %cst_203 {dimension_numbers = #tpu.dot_dimension_numbers<[2], [1], [1], [2], [0, 0, 0, 1, 1, 2], [0], [0]>} : vector<2x8x16xbf16>, vector<2x16x8xbf16>, vector<2x8x8xf32> -> vector<2x8x8xf32>
    %cst_204 = arith.constant dense<0xFF800000> : vector<2x8xf32>
    %295 = vector.multi_reduction <maximumf>, %294, %cst_204 [2] : vector<2x8x8xf32> to vector<2x8xf32>
    %296 = vector.shape_cast %295 : vector<2x8xf32> to vector<2x8x1xf32>
    %297 = vector.broadcast %296 : vector<2x8x1xf32> to vector<2x8x8xf32>
    %298 = arith.subf %294, %297 : vector<2x8x8xf32>
    %299 = math.exp %298 : vector<2x8x8xf32>
    %cst_205 = arith.constant dense<0.000000e+00> : vector<2x8xf32>
    %300 = vector.multi_reduction <add>, %299, %cst_205 [2] : vector<2x8x8xf32> to vector<2x8xf32>
    %301 = vector.shape_cast %300 : vector<2x8xf32> to vector<2x8x1xf32>
    %302 = tpu.reciprocal %301 {approx = true} : vector<2x8x1xf32> -> vector<2x8x1xf32>
    %303 = vector.broadcast %302 : vector<2x8x1xf32> to vector<2x8x8xf32>
    %304 = arith.mulf %299, %303 : vector<2x8x8xf32>
    %305 = arith.truncf %304 : vector<2x8x8xf32> to vector<2x8x8xbf16>
    %306 = arith.truncf %291 : vector<2x8x16xf32> to vector<2x8x16xbf16>
    %cst_206 = arith.constant dense<0.000000e+00> : vector<2x8x16xf32>
    %307 = tpu.matmul %305, %306, %cst_206 {dimension_numbers = #tpu.dot_dimension_numbers<[2], [1], [1], [2], [0, 0, 0, 1, 1, 2], [0], [0]>} : vector<2x8x8xbf16>, vector<2x8x16xbf16>, vector<2x8x16xf32> -> vector<2x8x16xf32>
    %308 = arith.truncf %307 : vector<2x8x16xf32> to vector<2x8x16xbf16>
    %c1_207 = arith.constant 1 : index
    %c0_208 = arith.constant 0 : index
    %c0_209 = arith.constant 0 : index
    %c0_210 = arith.constant 0 : index
    %309 = vector.load %arg12[%c1_207, %c0_208, %c0_209, %c0_210] : memref<2x2x16x32xbf16, #tpu.memory_space<vmem>>, vector<1x2x16x32xbf16>
    %310 = vector.shape_cast %309 : vector<1x2x16x32xbf16> to vector<2x16x32xbf16>
    %cst_211 = arith.constant dense<0.000000e+00> : vector<2x8x32xf32>
    %311 = tpu.matmul %308, %310, %cst_211 {dimension_numbers = #tpu.dot_dimension_numbers<[2], [1], [1], [2], [0, 0, 0, 1, 1, 2], [0], [0]>} : vector<2x8x16xbf16>, vector<2x16x32xbf16>, vector<2x8x32xf32> -> vector<2x8x32xf32>
    %cst_212 = arith.constant dense<0.000000e+00> : vector<8x32xf32>
    %312 = vector.multi_reduction <add>, %311, %cst_212 [0] : vector<2x8x32xf32> to vector<8x32xf32>
    %c8_213 = arith.constant 8 : index
    %c0_214 = arith.constant 0 : index
    %313 = vector.load %arg28[%c8_213, %c0_214] : memref<16x32xf32, #tpu.memory_space<vmem>>, vector<8x32xf32>
    tpu.vector_store %arg28[%c8_213, %c0_214], %312 {strides = array<i32>} : memref<16x32xf32, #tpu.memory_space<vmem>>, vector<8x32xf32>,
    %c0_215 = arith.constant 0 : index
    %c0_216 = arith.constant 0 : index
    %314 = vector.load %arg28[%c0_215, %c0_216] : memref<16x32xf32, #tpu.memory_space<vmem>>, vector<16x32xf32>
    %c1_217 = arith.constant 1 : index
    %c0_218 = arith.constant 0 : index
    %c0_219 = arith.constant 0 : index
    %315 = vector.load %arg13[%c1_217, %c0_218, %c0_219] : memref<2x1x32xf32, #tpu.memory_space<vmem>>, vector<1x1x32xf32>
    %316 = vector.shape_cast %315 : vector<1x1x32xf32> to vector<1x32xf32>
    %317 = vector.broadcast %316 : vector<1x32xf32> to vector<16x32xf32>
    %318 = arith.addf %314, %317 : vector<16x32xf32>
    %319 = arith.addf %318, %218 : vector<16x32xf32>
    %c1_220 = arith.constant 1 : index
    %c0_221 = arith.constant 0 : index
    %c0_222 = arith.constant 0 : index
    %320 = vector.load %arg14[%c1_220, %c0_221, %c0_222] : memref<2x1x32xf32, #tpu.memory_space<vmem>>, vector<1x1x32xf32>
    %321 = vector.shape_cast %320 : vector<1x1x32xf32> to vector<1x32xf32>
    %c1_223 = arith.constant 1 : index
    %c0_224 = arith.constant 0 : index
    %c0_225 = arith.constant 0 : index
    %322 = vector.load %arg15[%c1_223, %c0_224, %c0_225] : memref<2x1x32xf32, #tpu.memory_space<vmem>>, vector<1x1x32xf32>
    %323 = vector.shape_cast %322 : vector<1x1x32xf32> to vector<1x32xf32>
    %cst_226 = arith.constant dense<0.000000e+00> : vector<16xf32>
    %324 = vector.multi_reduction <add>, %319, %cst_226 [1] : vector<16x32xf32> to vector<16xf32>
    %325 = vector.shape_cast %324 : vector<16xf32> to vector<16x1xf32>
    %cst_227 = arith.constant 3.200000e+01 : f32
    %326 = vector.broadcast %cst_227 : f32 to vector<16x1xf32>
    %327 = arith.divf %325, %326 : vector<16x1xf32>
    %328 = vector.broadcast %327 : vector<16x1xf32> to vector<16x32xf32>
    %329 = arith.subf %319, %328 : vector<16x32xf32>
    %330 = arith.mulf %329, %329 : vector<16x32xf32>
    %cst_228 = arith.constant dense<0.000000e+00> : vector<16xf32>
    %331 = vector.multi_reduction <add>, %330, %cst_228 [1] : vector<16x32xf32> to vector<16xf32>
    %332 = vector.shape_cast %331 : vector<16xf32> to vector<16x1xf32>
    %cst_229 = arith.constant 3.200000e+01 : f32
    %333 = vector.broadcast %cst_229 : f32 to vector<16x1xf32>
    %334 = arith.divf %332, %333 : vector<16x1xf32>
    %335 = vector.broadcast %327 : vector<16x1xf32> to vector<16x32xf32>
    %336 = arith.subf %319, %335 : vector<16x32xf32>
    %cst_230 = arith.constant 9.99999996E-13 : f32
    %337 = vector.broadcast %cst_230 : f32 to vector<16x1xf32>
    %338 = arith.addf %334, %337 : vector<16x1xf32>
    %339 = math.rsqrt %338 : vector<16x1xf32>
    %340 = vector.broadcast %339 : vector<16x1xf32> to vector<16x32xf32>
    %341 = arith.mulf %336, %340 : vector<16x32xf32>
    %342 = vector.broadcast %321 : vector<1x32xf32> to vector<16x32xf32>
    %343 = arith.mulf %341, %342 : vector<16x32xf32>
    %344 = vector.broadcast %323 : vector<1x32xf32> to vector<16x32xf32>
    %345 = arith.addf %343, %344 : vector<16x32xf32>
    %346 = arith.truncf %345 : vector<16x32xf32> to vector<16x32xbf16>
    %c1_231 = arith.constant 1 : index
    %c0_232 = arith.constant 0 : index
    %c0_233 = arith.constant 0 : index
    %347 = vector.load %arg16[%c1_231, %c0_232, %c0_233] : memref<2x32x64xbf16, #tpu.memory_space<vmem>>, vector<1x32x64xbf16>
    %348 = vector.shape_cast %347 : vector<1x32x64xbf16> to vector<32x64xbf16>
    %cst_234 = arith.constant dense<0.000000e+00> : vector<16x64xf32>
    %349 = tpu.matmul %346, %348, %cst_234 {dimension_numbers = #tpu.dot_dimension_numbers<[1], [0], [0], [1], [0, 0, 1, 1], [], []>} : vector<16x32xbf16>, vector<32x64xbf16>, vector<16x64xf32> -> vector<16x64xf32>
    %c1_235 = arith.constant 1 : index
    %c0_236 = arith.constant 0 : index
    %c0_237 = arith.constant 0 : index
    %350 = vector.load %arg17[%c1_235, %c0_236, %c0_237] : memref<2x1x64xf32, #tpu.memory_space<vmem>>, vector<1x1x64xf32>
    %351 = vector.shape_cast %350 : vector<1x1x64xf32> to vector<1x64xf32>
    %352 = vector.broadcast %351 : vector<1x64xf32> to vector<16x64xf32>
    %353 = arith.addf %349, %352 : vector<16x64xf32>
    %cst_238 = arith.constant 5.000000e-01 : f32
    %354 = vector.broadcast %cst_238 : f32 to vector<16x64xf32>
    %355 = arith.mulf %354, %353 : vector<16x64xf32>
    %cst_239 = arith.constant 4.471500e-02 : f32
    %356 = vector.broadcast %cst_239 : f32 to vector<16x64xf32>
    %357 = arith.mulf %356, %353 : vector<16x64xf32>
    %358 = arith.mulf %357, %353 : vector<16x64xf32>
    %359 = arith.mulf %358, %353 : vector<16x64xf32>
    %360 = arith.addf %353, %359 : vector<16x64xf32>
    %cst_240 = arith.constant 0.797884583 : f32
    %361 = vector.broadcast %cst_240 : f32 to vector<16x64xf32>
    %362 = arith.mulf %361, %360 : vector<16x64xf32>
    %363 = math.tanh %362 : vector<16x64xf32>
    %cst_241 = arith.constant 1.000000e+00 : f32
    %364 = vector.broadcast %cst_241 : f32 to vector<16x64xf32>
    %365 = arith.addf %364, %363 : vector<16x64xf32>
    %366 = arith.mulf %355, %365 : vector<16x64xf32>
    %367 = arith.truncf %366 : vector<16x64xf32> to vector<16x64xbf16>
    %c1_242 = arith.constant 1 : index
    %c0_243 = arith.constant 0 : index
    %c0_244 = arith.constant 0 : index
    %368 = vector.load %arg18[%c1_242, %c0_243, %c0_244] : memref<2x64x32xbf16, #tpu.memory_space<vmem>>, vector<1x64x32xbf16>
    %369 = vector.shape_cast %368 : vector<1x64x32xbf16> to vector<64x32xbf16>
    %cst_245 = arith.constant dense<0.000000e+00> : vector<16x32xf32>
    %370 = tpu.matmul %367, %369, %cst_245 {dimension_numbers = #tpu.dot_dimension_numbers<[1], [0], [0], [1], [0, 0, 1, 1], [], []>} : vector<16x64xbf16>, vector<64x32xbf16>, vector<16x32xf32> -> vector<16x32xf32>
    %c1_246 = arith.constant 1 : index
    %c0_247 = arith.constant 0 : index
    %c0_248 = arith.constant 0 : index
    %371 = vector.load %arg19[%c1_246, %c0_247, %c0_248] : memref<2x1x32xf32, #tpu.memory_space<vmem>>, vector<1x1x32xf32>
    %372 = vector.shape_cast %371 : vector<1x1x32xf32> to vector<1x32xf32>
    %373 = vector.broadcast %372 : vector<1x32xf32> to vector<16x32xf32>
    %374 = arith.addf %370, %373 : vector<16x32xf32>
    %375 = arith.addf %374, %345 : vector<16x32xf32>
    %c1_249 = arith.constant 1 : index
    %c0_250 = arith.constant 0 : index
    %c0_251 = arith.constant 0 : index
    %376 = vector.load %arg20[%c1_249, %c0_250, %c0_251] : memref<2x1x32xf32, #tpu.memory_space<vmem>>, vector<1x1x32xf32>
    %377 = vector.shape_cast %376 : vector<1x1x32xf32> to vector<1x32xf32>
    %c1_252 = arith.constant 1 : index
    %c0_253 = arith.constant 0 : index
    %c0_254 = arith.constant 0 : index
    %378 = vector.load %arg21[%c1_252, %c0_253, %c0_254] : memref<2x1x32xf32, #tpu.memory_space<vmem>>, vector<1x1x32xf32>
    %379 = vector.shape_cast %378 : vector<1x1x32xf32> to vector<1x32xf32>
    %cst_255 = arith.constant dense<0.000000e+00> : vector<16xf32>
    %380 = vector.multi_reduction <add>, %375, %cst_255 [1] : vector<16x32xf32> to vector<16xf32>
    %381 = vector.shape_cast %380 : vector<16xf32> to vector<16x1xf32>
    %cst_256 = arith.constant 3.200000e+01 : f32
    %382 = vector.broadcast %cst_256 : f32 to vector<16x1xf32>
    %383 = arith.divf %381, %382 : vector<16x1xf32>
    %384 = vector.broadcast %383 : vector<16x1xf32> to vector<16x32xf32>
    %385 = arith.subf %375, %384 : vector<16x32xf32>
    %386 = arith.mulf %385, %385 : vector<16x32xf32>
    %cst_257 = arith.constant dense<0.000000e+00> : vector<16xf32>
    %387 = vector.multi_reduction <add>, %386, %cst_257 [1] : vector<16x32xf32> to vector<16xf32>
    %388 = vector.shape_cast %387 : vector<16xf32> to vector<16x1xf32>
    %cst_258 = arith.constant 3.200000e+01 : f32
    %389 = vector.broadcast %cst_258 : f32 to vector<16x1xf32>
    %390 = arith.divf %388, %389 : vector<16x1xf32>
    %391 = vector.broadcast %383 : vector<16x1xf32> to vector<16x32xf32>
    %392 = arith.subf %375, %391 : vector<16x32xf32>
    %cst_259 = arith.constant 9.99999996E-13 : f32
    %393 = vector.broadcast %cst_259 : f32 to vector<16x1xf32>
    %394 = arith.addf %390, %393 : vector<16x1xf32>
    %395 = math.rsqrt %394 : vector<16x1xf32>
    %396 = vector.broadcast %395 : vector<16x1xf32> to vector<16x32xf32>
    %397 = arith.mulf %392, %396 : vector<16x32xf32>
    %398 = vector.broadcast %377 : vector<1x32xf32> to vector<16x32xf32>
    %399 = arith.mulf %397, %398 : vector<16x32xf32>
    %400 = vector.broadcast %379 : vector<1x32xf32> to vector<16x32xf32>
    %401 = arith.addf %399, %400 : vector<16x32xf32>
    %402 = vector.shape_cast %401 : vector<16x32xf32> to vector<2x8x32xf32>
    %403 = vector.extract_strided_slice %402 {offsets = [0, 0, 0], sizes = [2, 1, 32], strides = [1, 1, 1]} : vector<2x8x32xf32> to vector<2x1x32xf32>
    %404 = vector.shape_cast %403 : vector<2x1x32xf32> to vector<2x32xf32>
    %405 = arith.truncf %404 : vector<2x32xf32> to vector<2x32xbf16>
    %c0_260 = arith.constant 0 : index
    %c0_261 = arith.constant 0 : index
    %406 = vector.load %arg22[%c0_260, %c0_261] : memref<32x32xbf16, #tpu.memory_space<vmem>>, vector<32x32xbf16>
    %cst_262 = arith.constant dense<0.000000e+00> : vector<2x32xf32>
    %407 = tpu.matmul %405, %406, %cst_262 {dimension_numbers = #tpu.dot_dimension_numbers<[1], [0], [0], [1], [0, 0, 1, 1], [], []>} : vector<2x32xbf16>, vector<32x32xbf16>, vector<2x32xf32> -> vector<2x32xf32>
    %c0_263 = arith.constant 0 : index
    %c0_264 = arith.constant 0 : index
    %408 = vector.load %arg23[%c0_263, %c0_264] : memref<1x32xf32, #tpu.memory_space<vmem>>, vector<1x32xf32>
    %409 = vector.broadcast %408 : vector<1x32xf32> to vector<2x32xf32>
    %410 = arith.addf %407, %409 : vector<2x32xf32>
    %411 = math.tanh %410 : vector<2x32xf32>
    %412 = arith.truncf %411 : vector<2x32xf32> to vector<2x32xbf16>
    %c0_265 = arith.constant 0 : index
    %c0_266 = arith.constant 0 : index
    %413 = vector.load %arg24[%c0_265, %c0_266] : memref<32x2xbf16, #tpu.memory_space<vmem>>, vector<32x2xbf16>
    %cst_267 = arith.constant dense<0.000000e+00> : vector<2x2xf32>
    %414 = tpu.matmul %412, %413, %cst_267 {dimension_numbers = #tpu.dot_dimension_numbers<[1], [0], [0], [1], [0, 0, 1, 1], [], []>} : vector<2x32xbf16>, vector<32x2xbf16>, vector<2x2xf32> -> vector<2x2xf32>
    %c0_268 = arith.constant 0 : index
    %c0_269 = arith.constant 0 : index
    %415 = vector.load %arg25[%c0_268, %c0_269] : memref<1x2xf32, #tpu.memory_space<vmem>>, vector<1x2xf32>
    %416 = vector.broadcast %415 : vector<1x2xf32> to vector<2x2xf32>
    %417 = arith.addf %414, %416 : vector<2x2xf32>
    %c0_270 = arith.constant 0 : index
    %c0_271 = arith.constant 0 : index
    %418 = vector.load %arg27[%c0_270, %c0_271] : memref<2x2xf32, #tpu.memory_space<vmem>>, vector<2x2xf32>
    tpu.vector_store %arg27[%c0_270, %c0_271], %417 {strides = array<i32>} : memref<2x2xf32, #tpu.memory_space<vmem>>, vector<2x2xf32>,
    %c0_272 = arith.constant 0 : index
    %c0_273 = arith.constant 0 : index
    %419 = vector.load %arg1[%c0_272, %c0_273] : memref<2x1xi32, #tpu.memory_space<vmem>>, vector<2x1xi32>
    %420 = tpu.iota {dimensions = array<i32: 1>} : vector<2x2xi32>
    %421 = vector.broadcast %419 : vector<2x1xi32> to vector<2x2xi32>
    %422 = arith.cmpi eq, %421, %420 : vector<2x2xi32>
    %cst_274 = arith.constant 1.000000e+00 : f32
    %cst_275 = arith.constant 0.000000e+00 : f32
    %423 = vector.broadcast %cst_274 : f32 to vector<2x2xf32>
    %424 = vector.broadcast %cst_275 : f32 to vector<2x2xf32>
    %425 = arith.select %422, %423, %424 : vector<2x2xi1>, vector<2x2xf32>
    %cst_276 = arith.constant dense<0xFF800000> : vector<2xf32>
    %426 = vector.multi_reduction <maximumf>, %417, %cst_276 [1] : vector<2x2xf32> to vector<2xf32>
    %427 = vector.shape_cast %426 : vector<2xf32> to vector<2x1xf32>
    %428 = vector.broadcast %427 : vector<2x1xf32> to vector<2x2xf32>
    %429 = arith.subf %417, %428 : vector<2x2xf32>
    %430 = math.exp %429 : vector<2x2xf32>
    %cst_277 = arith.constant dense<0.000000e+00> : vector<2xf32>
    %431 = vector.multi_reduction <add>, %430, %cst_277 [1] : vector<2x2xf32> to vector<2xf32>
    %432 = vector.shape_cast %431 : vector<2xf32> to vector<2x1xf32>
    %433 = math.log %432 : vector<2x1xf32>
    %434 = arith.addf %433, %427 : vector<2x1xf32>
    %435 = arith.mulf %417, %425 : vector<2x2xf32>
    %cst_278 = arith.constant dense<0.000000e+00> : vector<2xf32>
    %436 = vector.multi_reduction <add>, %435, %cst_278 [1] : vector<2x2xf32> to vector<2xf32>
    %437 = vector.shape_cast %436 : vector<2xf32> to vector<2x1xf32>
    %438 = arith.subf %434, %437 : vector<2x1xf32>
    %439 = vector.shape_cast %438 : vector<2x1xf32> to vector<1x2x1xf32>
    %cst_279 = arith.constant dense<0.000000e+00> : vector<1xf32>
    %440 = vector.multi_reduction <add>, %439, %cst_279 [1, 2] : vector<1x2x1xf32> to vector<1xf32>
    %441 = vector.shape_cast %440 : vector<1xf32> to vector<1x1x1xf32>
    %442 = vector.extract %441[0, 0, 0] : f32 from vector<1x1x1xf32>
    %cst_280 = arith.constant 2.000000e+00 : f32
    %443 = arith.divf %442, %cst_280 : f32
    %444 = vector.broadcast %443 : f32 to vector<1x1xf32>
    %c0_281 = arith.constant 0 : index
    %c0_282 = arith.constant 0 : index
    %445 = vector.load %arg26[%c0_281, %c0_282] : memref<1x1xf32, #tpu.memory_space<vmem>>, vector<1x1xf32>
    tpu.vector_store %arg26[%c0_281, %c0_282], %444 {strides = array<i32>} : memref<1x1xf32, #tpu.memory_space<vmem>>, vector<1x1xf32>,
    return
  }
}

</mosaic_0001>

<bundles_post_ra>
// kernel: bert_single_forward.1
= control target key start
LH: loop header
LB: loop body
LE: loop exit
PB: predicated region body
PF: predicated region fallthrough
CT: control target
= control target key end

     0   :  { %s3804_s0 = inlined_call_operand.vmem [shape: s32[16,1], index: 0, kind: input, shape index: {}]   ;;  %s3805_s1 = inlined_call_operand.vmem [shape: s32[2,1], index: 1, kind: input, shape index: {}]   ;;  %s3806_s2 = inlined_call_operand.vmem [shape: bf16[100,32], index: 2, kind: input, shape index: {}]   ;;  %s3807_s3 = inlined_call_operand.vmem [shape: f32[16,32], index: 3, kind: input, shape index: {}]   ;;  %s3808_s4 = inlined_call_operand.vmem [shape: f32[1,32], index: 4, kind: input, shape index: {}]   ;;  %s3809_s5 = inlined_call_operand.vmem [shape: f32[1,32], index: 5, kind: input, shape index: {}]   ;;  %s3810_s6 = inlined_call_operand.vmem [shape: bf16[2,2,32,16], index: 6, kind: input, shape index: {}]   ;;  %s3811_s7 = inlined_call_operand.vmem [shape: f32[2,2,1,16], index: 7, kind: input, shape index: {}]   ;;  %s3812_s8 = inlined_call_operand.vmem [shape: bf16[2,2,16,32], index: 8, kind: input, shape index: {}]   ;;  %s3813_s9 = inlined_call_operand.vmem [shape: f32[2,2,16,1], index: 9, kind: input, shape index: {}]   ;;  %s3814_s10 = inlined_call_operand.vmem [shape: bf16[2,2,32,16], index: 10, kind: input, shape index: {}]   ;;  %s3815_s11 = inlined_call_operand.vmem [shape: f32[2,2,1,16], index: 11, kind: input, shape index: {}]   ;;  %s3816_s12 = inlined_call_operand.vmem [shape: bf16[2,2,16,32], index: 12, kind: input, shape index: {}]   ;;  %s3817_s13 = inlined_call_operand.vmem [shape: f32[2,1,32], index: 13, kind: input, shape index: {}]   ;;  %s3818_s14 = inlined_call_operand.vmem [shape: f32[2,1,32], index: 14, kind: input, shape index: {}]   ;;  %s3819_s15 = inlined_call_operand.vmem [shape: f32[2,1,32], index: 15, kind: input, shape index: {}]   ;;  %s3820_s16 = inlined_call_operand.vmem [shape: bf16[2,32,64], index: 16, kind: input, shape index: {}]   ;;  %s3821_s17 = inlined_call_operand.vmem [shape: f32[2,1,64], index: 17, kind: input, shape index: {}]   ;;  %s3822_s18 = inlined_call_operand.vmem [shape: bf16[2,64,32], index: 18, kind: input, shape index: {}]   ;;  %s3823_s19 = inlined_call_operand.vmem [shape: f32[2,1,32], index: 19, kind: input, shape index: {}]   ;;  %s3824_s20 = inlined_call_operand.vmem [shape: f32[2,1,32], index: 20, kind: input, shape index: {}]   ;;  %s3825_s21 = inlined_call_operand.vmem [shape: f32[2,1,32], index: 21, kind: input, shape index: {}]   ;;  %s3826_s22 = inlined_call_operand.vmem [shape: bf16[32,32], index: 22, kind: input, shape index: {}]   ;;  %s3827_s23 = inlined_call_operand.vmem [shape: f32[1,32], index: 23, kind: input, shape index: {}]   ;;  %s3828_s24 = inlined_call_operand.vmem [shape: bf16[32,2], index: 24, kind: input, shape index: {}]   ;;  %s3829_s25 = inlined_call_operand.vmem [shape: f32[1,2], index: 25, kind: input, shape index: {}]   ;;  %s3830_s26 = inlined_call_operand.hbm [shape: f32[1,1], index: 26, kind: output, shape index: {0}]   ;;  %s3831_s27 = inlined_call_operand.hbm [shape: f32[2,2], index: 27, kind: output, shape index: {1}]  }
   0x1   :  { %3841 = sst [smem:[#allocation9_spill]] %s3804_s0 }
   0x2   :  { %3842 = sst [smem:[#allocation10_spill]] %s3805_s1 }
   0x3   :  { %3843 = sst [smem:[#allocation11_spill]] %s3806_s2 }
   0x4   :  { %3844 = sst [smem:[#allocation12_spill]] %s3807_s3 }
   0x5   :  { %3845 = sst [smem:[#allocation13_spill]] %s3808_s4 }
   0x6   :  { %3846 = sst [smem:[#allocation14_spill]] %s3809_s5 }
   0x7   :  { %3847 = sst [smem:[#allocation15_spill]] %s3810_s6 }
   0x8   :  { %3848 = sst [smem:[#allocation16_spill]] %s3811_s7 }
   0x9   :  { %3849 = sst [smem:[#allocation17_spill]] %s3812_s8 }
   0xa   :  { %3850 = sst [smem:[#allocation18_spill]] %s3813_s9 }
   0xb   :  { %3851 = sst [smem:[#allocation19_spill]] %s3814_s10 }
   0xc   :  { %3852 = sst [smem:[#allocation20_spill]] %s3815_s11 }
   0xd   :  { %3853 = sst [smem:[#allocation21_spill]] %s3830_s26 }
   0xe   :  { %33 = vsyncpa [#allocation4], 0  ;;  %s3854_s8 = sld [smem:[#allocation9_spill]]  ;;  %v3056_v1 = vmov 0   ;;  %vm161_vm0 = vcmask 1041408  }
   0xf   :  { %2897 = vset.pattern.permute.xlu0 %v3056_v1  ;;  %s3855_s5 = sld [smem:[#allocation11_spill]]  ;;  %2899 = vset.pattern.permute.xlu1 %v3056_v1 }
  0x10   :  { %2898 = vset.pattern.permute.xlu2 %v3056_v1 }
  0x14   :  { %v88_v0 = vld [vmem:[%s3854_s8] sm:$0xff]  ;;  %v89_v5 = vld [vmem:[%s3854_s8 + $0x8] sm:$0xff] }
  0x15   :  { %v115_v2 = vld [vmem:[%s3855_s5 + $0x30] sm:$0x3]  ;;  %93 = vperm.xlu0 %2897, %v88_v0   ;;  %v2822_v7 = vld [vmem:[%s3855_s5 + $0x28] sm:$0xff]  ;;  %v2821_v8 = vld [vmem:[%s3855_s5 + $0x20] sm:$0xff] }
  0x16   :  { %v143_v3 = vunpack.c.l.b16 %v115_v2 }
  0x18   :  { %v150_v4 = vpack.c.b16 %v143_v3, %v143_v3 }
  0x1a   :  { %v163_v6 = vsel %vm161_vm0, %v150_v4, 0 }
  0x1b   :  { %166 = vmatpush.bf16.msra.mxu0 %v163_v6 }
  0x1d   :  { %96 = vperm.xlu0 %2897, %v89_v5  }
  0x1f   :  { %167 = vmatpush.bf16.msra.mxu0 %v2822_v7 }
  0x20   :  { %34 = vsyncpa [#allocation6], 0  ;;  %s3856_s3 = sld [smem:[#allocation18_spill]]  ;;  %v2820_v10 = vld [vmem:[%s3855_s5 + $0x18] sm:$0xff]  ;;  %v2819_v11 = vld [vmem:[%s3855_s5 + $0x10] sm:$0xff]  ;;  %v90_v14 = vlaneseq  ;;  %v3057_v18 = vmov 0.0  }
  0x21   :  { %v2818_v12 = vld [vmem:[%s3855_s5 + $0x8] sm:$0xff]  ;;  %v2817_v13 = vld [vmem:[%s3855_s5] sm:$0xff]  ;;  %vm157_vm3 = vcmask 818176   ;;  %s3857_s1 = sld [smem:[#allocation12_spill]]  ;;  %vm181_vm4 = vcmask 261120   ;;  %v3058_v26 = vmov 32.0  }
  0x22   :  { %v3235_v16 = vand.u32 127, %v90_v14  ;;  %2934 = vrcp.f32 %v3058_v26  ;;  %s3858_s2 = sld [smem:[#allocation15_spill]]  ;;  %vm533_vm9 = vcmask 1043456   ;;  %vm464_vm10 = vcmask 130048  }
  0x23   :  { %168 = vmatpush.bf16.msra.mxu0 %v2821_v8  ;;  %s3859_s29 = sld [smem:[#allocation19_spill]]  ;;  %vm503_vm11 = vcmask 64512  }
  0x24   :  { %s3860_s4 = sld [smem:[#allocation13_spill]] }
  0x25   :  { %s3861_s9 = sld [smem:[#allocation14_spill]] }
  0x26   :  { %v3220_v9 = vld [vmem:[%s3856_s3] sm:$0xff]  ;;  %v3281_v57 = vld [vmem:[%s3856_s3 + $0x8] sm:$0xff]  ;;  %v3286_v58 = vld [vmem:[%s3856_s3 + $0x10] sm:$0xff]  ;;  %s3862_s0 = sld [smem:[#allocation17_spill]] }
  0x27   :  { %324 = vperm.xlu0 %2897, %v3220_v9   ;;  %169 = vmatpush.bf16.msra.mxu0 %v2820_v10  ;;  %v116_v22 = vld [vmem:[%s3857_s1] sm:$0xff]  ;;  %v3302_v63 = vld [vmem:[%s3856_s3 + $0x18] sm:$0xff]  ;;  %s3863_s7 = sld [smem:[#allocation20_spill]] }
  0x28   :  { %v2935_v27 = vpop.eup %2934  ;;  %v2824_v38 = vld [vmem:[%s3858_s2 + $0x8] sm:$0xff]  ;;  %v2826_v39 = vld [vmem:[%s3858_s2 + $0x18] sm:$0xff]  ;;  %v2823_v40 = vld [vmem:[%s3858_s2] sm:$0xff]  ;;  %334 = vperm.xlu2 %2898, %v3286_v58   ;;  %s3864_s30 = sld [smem:[#allocation16_spill]] }
  0x29   :  { %v189_v28 = vmul.f32 32.0, %v2935_v27  ;;  %vm193_vm5 = vweird.f32 %v2935_v27  ;;  %282 = vmatpush.bf16.msra.mxu1 %v2824_v38  ;;  %307 = vmatpush.bf16.msra.mxu2 %v2826_v39  ;;  %v2825_v41 = vld [vmem:[%s3858_s2 + $0x10] sm:$0xff]  ;;  %v2830_v45 = vld [vmem:[%s3859_s29 + $0x8] sm:$0xff]  ;;  %v2829_v46 = vld [vmem:[%s3859_s29] sm:$0xff]  ;;  %s3865_s8 = sld [smem:[#allocation10_spill]] }
  0x2a   :  { %v3271_v53 = vld [vmem:[%s3860_s4] ss:$0 sm:$0xff]  ;;  %v2832_v62 = vld [vmem:[%s3859_s29 + $0x18] sm:$0xff]  ;;  %v2831_v1 = vld [vmem:[%s3859_s29 + $0x10] sm:$0xff] }
  0x2b   :  { %170 = vmatpush.bf16.msra.mxu0 %v2819_v11  ;;  %v190_v29 = vsub.f32 1.0, %v189_v28  ;;  %v3276_v55 = vld [vmem:[%s3861_s9] ss:$0 sm:$0xff] }
  0x2c   :  { %v2827_v2 = vld [vmem:[%s3862_s0] sm:$0xff]  ;;  %v2828_v3 = vld [vmem:[%s3862_s0 + $0x8] sm:$0xff] }
  0x2d   :  { %v191_v30 = vmul.f32 %v2935_v27, %v190_v29  ;;  %283 = vmatpush.bf16.msra.mxu1 %v2823_v40  ;;  %308 = vmatpush.bf16.msra.mxu2 %v2825_v41  ;;  %v2904_v14 = vld [vmem:[%s3863_s7] ss:$0 sm:$0xff] }
  0x2f   :  { %171 = vmatpush.bf16.msra.mxu0 %v2818_v12  ;;  %v192_v31 = vadd.f32 %v2935_v27, %v191_v30 }
  0x30   :  { %339 = vperm.xlu2 %2898, %v3302_v63  }
  0x31   :  { %v3245_v32 = vsel %vm193_vm5, %v2935_v27, %v192_v31  ;;  %420 = vmatpush.bf16.msrb.mxu2 %v2830_v45  ;;  %v2903_v31 = vld [vmem:[%s3864_s30 + $0x1] ss:$0 sm:$0xff] }
  0x33   :  { %172 = vmatpush.bf16.msra.mxu0 %v2817_v13 }
  0x35   :  { %421 = vmatpush.bf16.msrb.mxu2 %v2829_v46 }
  0x82   :  { %v335_v7 = vpop.permute.xlu2 %334 }
  0x87   :  { %v94_v15 = vpop.permute.xlu0 %93 }
  0x88   :  { %vm98_vm1 = vcmp.eq.s32.totalorder %v94_v15, %v3235_v16 }
  0x89   :  { %v100_v19 = vsel %vm98_vm1, 1.0, %v3057_v18 }
  0x8f   :  { %v97_v17 = vpop.permute.xlu0 %96 }
  0x90   :  { %vm99_vm2 = vcmp.eq.s32.totalorder %v97_v17, %v3235_v16 }
  0x91   :  { %v101_v20 = vsel %vm99_vm2, 1.0, %v3057_v18 }
  0x92   :  { %v102_v21 = vpack.c.bf16 %v101_v20, %v100_v19 }
  0x94   :  { %2423 = vmatmul.msk.bf16.vlgmr.msra.gmra.mxu0 %vm157_vm3, %v102_v21 }
  0x99   :  { %v325_v12 = vpop.permute.xlu0 %324 }
 0x111   :  { %v174_v23 = vpop.f32.mrf.mxu0 }
 0x112   :  { %v175_v24 = vadd.f32 %v174_v23, %v116_v22 }
 0x114   :  { %v182_v25 = vsel %vm181_vm4, %v175_v24, 0.0 }
 0x115   :  { %183 = vadd.xlane.f32.xlu1 %v182_v25  ;;  %v340_v25 = vpop.permute.xlu2 %339 }
 0x188   :  { %v184_v33 = vpop.xlane.xlu1 %183 }
 0x189   :  { %v195_v34 = vmul.f32 %v3245_v32, %v184_v33 }
 0x18b   :  { %v197_v35 = vsub.f32 %v175_v24, %v195_v34  ;;  %v2902_v24 = vld [vmem:[%s3864_s30] ss:$0 sm:$0xff] }
 0x18d   :  { %v199_v36 = vmul.f32 %v197_v35, %v197_v35 }
 0x18f   :  { %v201_v37 = vsel %vm181_vm4, %v199_v36, 0.0 }
 0x190   :  { %202 = vadd.xlane.f32.xlu1 %v201_v37  ;;  %v2905_v37 = vld [vmem:[%s3863_s7 + $0x1] ss:$0 sm:$0xff] }
 0x1a9   :  { %329 = vperm.xlu1 %2899, %v3281_v57  }
 0x203   :  { %v203_v42 = vpop.xlane.xlu1 %202 }
 0x204   :  { %v207_v43 = vmul.f32 %v203_v42, %v3245_v32 }
 0x206   :  { %v209_v44 = vadd.f32 1e-12, %v207_v43 }
 0x208   :  { %2936 = vrsqrt.f32 %v209_v44  ;;  %vm217_vm7 = vweird.f32 %v209_v44 }
 0x20e   :  { %v2937_v47 = vpop.eup %2936 }
 0x20f   :  { %v212_v48 = vmul.f32 %v2937_v47, %v209_v44  ;;  %vm218_vm6 = vweird.f32 %v2937_v47 }
 0x210   :  { %vm219_vm8 = vmor %vm217_vm7, %vm218_vm6  ;;  %vm1157_vm6 = vcmask 523264  }
 0x211   :  { %v213_v49 = vmul.f32 %v2937_v47, %v212_v48 }
 0x213   :  { %v214_v50 = vmul.f32 0.5, %v213_v49 }
 0x215   :  { %v215_v51 = vsub.f32 1.5, %v214_v50 }
 0x217   :  { %v216_v52 = vmul.f32 %v2937_v47, %v215_v51 }
 0x219   :  { %v220_v54 = vsel %vm219_vm8, %v2937_v47, %v216_v52 }
 0x21a   :  { %v231_v56 = vmul.f32 %v220_v54, %v197_v35 }
 0x21b   :  { %v330_v15 = vpop.permute.xlu1 %329 }
 0x21c   :  { %v236_v59 = vmul.f32 %v3271_v53, %v231_v56 }
 0x21e   :  { %v3292_v60 = vadd.f32 %v3276_v55, %v236_v59 }
 0x220   :  { %v243_v61 = vpack.c.bf16 %v3292_v60, %v3292_v60 }
 0x222   :  { %2432 = vmatmul.msk.bf16.vlgmr.msra.gmra.mxu1 %vm181_vm4, %v243_v61  ;;  %2441 = vmatmul.msk.bf16.vlgmr.msra.gmra.mxu2 %vm181_vm4, %v243_v61  ;;  %v274_v0 = vsel %vm181_vm4, %v243_v61, 0 }
 0x223   :  { %357 = vmatpush.bf16.xpose.msra.mxu3 %v274_v0  ;;  %379 = vmatpush.bf16.xpose.msrb.mxu1 %v274_v0 }
 0x22a   :  { %2446 = vmatmul.msk.bf16.vlgmr.msra.gmra.mxu3 %vm181_vm4, %v2827_v2 }
 0x22b   :  { %445 = vmatpush.bf16.msrb.mxu3 %v2832_v62 }
 0x22f   :  { %446 = vmatpush.bf16.msrb.mxu3 %v2831_v1 }
 0x232   :  { %2451 = vmatmul.msk.bf16.vlgmr.msrb.gmra.mxu1 %vm181_vm4, %v2828_v3  ;;  %2460 = vmatmul.msk.bf16.vlgmr.msrb.gmra.mxu2 %vm181_vm4, %v243_v61 }
 0x23a   :  { %2469 = vmatmul.msk.bf16.vlgmr.msrb.gmra.mxu3 %vm181_vm4, %v243_v61 }
 0x29f   :  { %v285_v4 = vpop.f32.mrf.mxu1 }
 0x2a0   :  { %v286_v38 = vadd.f32 %v2902_v24, %v285_v4 }
 0x2a2   :  { %v452_v47 = vpack.c.bf16 %v286_v38, %v286_v38  ;;  %v2841_v38 = vld [vmem:[%s3859_s29] sm:$0xff] }
 0x2a5   :  { %v310_v5 = vpop.f32.mrf.mxu2 }
 0x2a6   :  { %v311_v42 = vadd.f32 %v2903_v31, %v310_v5  ;;  %v2837_v31 = vld [vmem:[%s3858_s2 + $0x10] sm:$0xff] }
 0x2a7   :  { %v287_v6 = vpop.f32.mrf.mxu1 }
 0x2a8   :  { %v453_v49 = vpack.c.bf16 %v311_v42, %v311_v42 }
 0x2ad   :  { %v312_v8 = vpop.f32.mrf.mxu2  ;;  %v359_v10 = vpop.f32.mrf.mxu3 }
 0x2ae   :  { %v360_v13 = vadd.f32 %v359_v10, %v325_v12  ;;  %v117_v8 = vld [vmem:[%s3857_s1 + $0x8] sm:$0xff]  ;;  %v176_v10 = vpop.f32.mrf.mxu0 }
 0x2af   :  { %v381_v11 = vpop.f32.mrf.mxu1 }
 0x2b0   :  { %v382_v17 = vadd.f32 %v381_v11, %v335_v7  ;;  %v454_v21 = vpack.c.bf16 %v360_v13, %v360_v13  ;;  %v177_v11 = vadd.f32 %v176_v10, %v117_v8 }
 0x2b2   :  { %v456_v27 = vpack.c.bf16 %v382_v17, %v382_v17  ;;  %v460_v33 = vunpack.c.l.b16 %v454_v21 }
 0x2b4   :  { %v483_v39 = vunpack.c.l.b16 %v456_v27 }
 0x2b5   :  { %v361_v19 = vpop.f32.mrf.mxu3  ;;  %v423_v20 = vpop.f32.mrf.mxu2 }
 0x2b6   :  { %v424_v22 = vadd.f32 %v2904_v14, %v423_v20  ;;  %v362_v23 = vadd.f32 %v361_v19, %v330_v15  ;;  %v185_v14 = vsel %vm181_vm4, %v177_v11, 0.0 }
 0x2b7   :  { %v383_v26 = vpop.f32.mrf.mxu1 }
 0x2b8   :  { %v528_v28 = vpack.c.bf16 %v424_v22, %v424_v22  ;;  %v455_v29 = vpack.c.bf16 %v362_v23, %v362_v23  ;;  %v384_v30 = vadd.f32 %v383_v26, %v340_v25 }
 0x2ba   :  { %v535_v34 = vsel %vm533_vm9, %v528_v28, 0  ;;  %v461_v35 = vunpack.c.l.b16 %v455_v29  ;;  %v457_v36 = vpack.c.bf16 %v384_v30, %v384_v30  ;;  %v2833_v28 = vld [vmem:[%s3816_s12] sm:$0xff]  ;;  %v2834_v29 = vld [vmem:[%s3816_s12 + $0x8] sm:$0xff] }
 0x2bb   :  { %544 = vmatpush.bf16.msra.mxu3 %v535_v34  ;;  %v2836_v30 = vld [vmem:[%s3858_s2 + $0x8] sm:$0xff] }
 0x2bc   :  { %v462_v40 = vpack.c.b16 %v461_v35, %v460_v33  ;;  %v484_v41 = vunpack.c.l.b16 %v457_v36  ;;  %v2842_v36 = vld [vmem:[%s3859_s29 + $0x8] sm:$0xff] }
 0x2bd   :  { %v425_v43 = vpop.f32.mrf.mxu2  ;;  %v448_v44 = vpop.f32.mrf.mxu3 }
 0x2be   :  { %v485_v45 = vpack.c.b16 %v484_v41, %v483_v39  ;;  %v449_v46 = vadd.f32 %v2905_v37, %v448_v44  ;;  %475 = vmatpush.bf16.msra.mxu1 %v462_v40  ;;  %v2844_v37 = vld [vmem:[%s3859_s29 + $0x18] sm:$0xff]  ;;  %v2843_v39 = vld [vmem:[%s3859_s29 + $0x10] sm:$0xff] }
 0x2bf   :  { %660 = vmatpush.bf16.msrb.mxu3 %v2836_v30 }
 0x2c0   :  { %v529_v48 = vpack.c.bf16 %v449_v46, %v449_v46  ;;  %497 = vmatpush.bf16.msra.mxu2 %v485_v45 }
 0x2c1   :  { %2470 = vmatmul.msk.bf16.vlgmr.msra.gmra.mxu1 %vm464_vm10, %v452_v47 }
 0x2c2   :  { %v554_v50 = vsel %vm533_vm9, %v529_v48, 0  ;;  %591 = vmatpush.bf16.msrb.mxu1 %v2833_v28 }
 0x2c3   :  { %2471 = vmatmul.msk.bf16.vlgmr.msra.gmra.mxu2 %vm464_vm10, %v453_v49  ;;  %563 = vmatpush.bf16.msrb.mxu0 %v554_v50 }
 0x2c4   :  { %613 = vmatpush.bf16.msrb.mxu2 %v2834_v29  ;;  %v2909_v29 = vld [vmem:[%s3863_s7] ss:$0 sm:$0xff] }
 0x2c5   :  { %v450_v51 = vpop.f32.mrf.mxu3 }
 0x33e   :  { %v477_v52 = vpop.f32.mrf.mxu1 }
 0x33f   :  { %v504_v54 = vsel %vm503_vm11, %v477_v52, -inf }
 0x340   :  { %505 = vmax.xlane.f32.xlu0 %v504_v54 }
 0x346   :  { %v479_v56 = vpop.f32.mrf.mxu1  ;;  %v499_v59 = vpop.f32.mrf.mxu2 }
 0x347   :  { %v507_v61 = vsel %vm503_vm11, %v499_v59, -inf }
 0x348   :  { %508 = vmax.xlane.f32.xlu2 %v507_v61 }
 0x34e   :  { %v501_v62 = vpop.f32.mrf.mxu2 }
 0x3b3   :  { %v506_v0 = vpop.xlane.xlu0 %505 }
 0x3b4   :  { %v510_v1 = vsub.f32 %v477_v52, %v506_v0  ;;  %v2839_v0 = vld [vmem:[%s3862_s0] sm:$0xff] }
 0x3b6   :  { %v512_v2 = vmul.f32 1.442695, %v510_v1 }
 0x3b8   :  { %2938 = vpow2.f32 %v512_v2 }
 0x3bb   :  { %v509_v3 = vpop.xlane.xlu2 %508 }
 0x3bc   :  { %v511_v4 = vsub.f32 %v499_v59, %v509_v3 }
 0x3be   :  { %v2939_v5 = vpop.eup %2938  ;;  %v514_v6 = vmul.f32 1.442695, %v511_v4 }
 0x3bf   :  { %v516_v7 = vsel %vm503_vm11, %v2939_v5, 0.0 }
 0x3c0   :  { %2940 = vpow2.f32 %v514_v6  ;;  %517 = vadd.xlane.f32.xlu2 %v516_v7 }
 0x3c6   :  { %v2941_v12 = vpop.eup %2940 }
 0x3c7   :  { %v519_v13 = vsel %vm503_vm11, %v2941_v12, 0.0 }
 0x3c8   :  { %520 = vadd.xlane.f32.xlu1 %v519_v13  ;;  %186 = vadd.xlane.f32.xlu2 %v185_v14 }
 0x3e0   :  { %712 = vperm.xlu2 %2898, %v3286_v58  }
 0x3e1   :  { %702 = vperm.xlu1 %2899, %v3220_v9  }
 0x433   :  { %v518_v15 = vpop.xlane.xlu2 %517 }
 0x434   :  { %2942 = vrcp.f32 %v518_v15  ;;  %v2908_v15 = vld [vmem:[%s3863_s7 + $0x1] ss:$0 sm:$0xff] }
 0x43a   :  { %v2943_v17 = vpop.eup %2942 }
 0x43b   :  { %v524_v19 = vmul.f32 %v2943_v17, %v2939_v5  ;;  %v521_v20 = vpop.xlane.xlu1 %520  ;;  %v187_v21 = vpop.xlane.xlu2 %186 }
 0x43c   :  { %2944 = vrcp.f32 %v521_v20  ;;  %v196_v22 = vmul.f32 %v3245_v32, %v187_v21 }
 0x43d   :  { %v526_v23 = vpack.c.bf16 %v524_v19, %v524_v19 }
 0x43e   :  { %v198_v24 = vsub.f32 %v177_v11, %v196_v22 }
 0x43f   :  { %2472 = vmatmul.msk.bf16.vlgmr.msra.gmra.mxu3 %vm503_vm11, %v526_v23 }
 0x440   :  { %v200_v25 = vmul.f32 %v198_v24, %v198_v24 }
 0x442   :  { %v2945_v26 = vpop.eup %2944  ;;  %v204_v27 = vsel %vm181_vm4, %v200_v25, 0.0 }
 0x443   :  { %v525_v58 = vmul.f32 %v2945_v26, %v2941_v12  ;;  %205 = vadd.xlane.f32.xlu0 %v204_v27  ;;  %v713_v26 = vpop.permute.xlu2 %712  ;;  %v2907_v27 = vld [vmem:[%s3864_s30] ss:$0 sm:$0xff] }
 0x445   :  { %v527_v9 = vpack.c.bf16 %v525_v58, %v525_v58 }
 0x447   :  { %2473 = vmatmul.msk.bf16.vlgmr.msrb.gmra.mxu0 %vm503_vm11, %v527_v9 }
 0x453   :  { %v703_v13 = vpop.permute.xlu1 %702 }
 0x457   :  { %717 = vperm.xlu0 %2897, %v3302_v63   ;;  %v2838_v63 = vld [vmem:[%s3858_s2 + $0x18] sm:$0xff] }
 0x458   :  { %685 = vmatpush.bf16.msra.mxu0 %v2838_v63 }
 0x45c   :  { %686 = vmatpush.bf16.msra.mxu0 %v2837_v31 }
 0x45f   :  { %707 = vperm.xlu0 %2897, %v3281_v57   ;;  %v2835_v57 = vld [vmem:[%s3858_s2] sm:$0xff] }
 0x460   :  { %661 = vmatpush.bf16.msrb.mxu3 %v2835_v57  ;;  %823 = vmatpush.bf16.msrb.mxu0 %v2844_v37 }
 0x464   :  { %798 = vmatpush.bf16.msra.mxu3 %v2842_v36  ;;  %824 = vmatpush.bf16.msrb.mxu0 %v2843_v39  ;;  %v2906_v39 = vld [vmem:[%s3864_s30 + $0x1] ss:$0 sm:$0xff] }
 0x468   :  { %799 = vmatpush.bf16.msra.mxu3 %v2841_v38 }
 0x4b6   :  { %v206_v33 = vpop.xlane.xlu0 %205 }
 0x4b7   :  { %v208_v34 = vmul.f32 %v206_v33, %v3245_v32 }
 0x4b9   :  { %v210_v35 = vadd.f32 1e-12, %v208_v34 }
 0x4bb   :  { %2946 = vrsqrt.f32 %v210_v35  ;;  %vm227_vm13 = vweird.f32 %v210_v35 }
 0x4c1   :  { %v2947_v40 = vpop.eup %2946 }
 0x4c2   :  { %v222_v41 = vmul.f32 %v2947_v40, %v210_v35  ;;  %v546_v42 = vpop.f32.mrf.mxu3  ;;  %vm228_vm12 = vweird.f32 %v2947_v40 }
 0x4c3   :  { %v569_v43 = vpack.c.bf16 %v546_v42, %v546_v42  ;;  %vm229_vm14 = vmor %vm227_vm13, %vm228_vm12 }
 0x4c4   :  { %v223_v44 = vmul.f32 %v2947_v40, %v222_v41  ;;  %v565_v45 = vpop.f32.mrf.mxu0 }
 0x4c5   :  { %v570_v46 = vpack.c.bf16 %v565_v45, %v565_v45  ;;  %2478 = vmatmul.msk.bf16.vlgmr.msrb.gmra.mxu1 %vm464_vm10, %v569_v43 }
 0x4c6   :  { %v224_v47 = vmul.f32 0.5, %v223_v44 }
 0x4c7   :  { %2483 = vmatmul.msk.bf16.vlgmr.msrb.gmra.mxu2 %vm464_vm10, %v570_v46 }
 0x4c8   :  { %v225_v48 = vsub.f32 1.5, %v224_v47 }
 0x4c9   :  { %v718_v8 = vpop.permute.xlu0 %717 }
 0x4ca   :  { %v226_v49 = vmul.f32 %v2947_v40, %v225_v48  ;;  %v548_v50 = vpop.f32.mrf.mxu3 }
 0x4cc   :  { %v230_v51 = vsel %vm229_vm14, %v2947_v40, %v226_v49  ;;  %v567_v52 = vpop.f32.mrf.mxu0 }
 0x4cd   :  { %v232_v54 = vmul.f32 %v230_v51, %v198_v24 }
 0x4cf   :  { %v237_v56 = vmul.f32 %v3271_v53, %v232_v54  ;;  %v2840_v53 = vld [vmem:[%s3862_s0 + $0x8] sm:$0xff] }
 0x4d1   :  { %v3388_v59 = vadd.f32 %v3276_v55, %v237_v56  ;;  %v708_v20 = vpop.permute.xlu0 %707  ;;  %v3428_v56 = vld [vmem:[%s3817_s13] ss:$0 sm:$0xff] }
 0x4d3   :  { %v244_v61 = vpack.c.bf16 %v3388_v59, %v3388_v59 }
 0x4d5   :  { %2492 = vmatmul.msk.bf16.vlgmr.msrb.gmra.mxu3 %vm181_vm4, %v244_v61  ;;  %2501 = vmatmul.msk.bf16.vlgmr.msra.gmra.mxu0 %vm181_vm4, %v244_v61  ;;  %v652_v62 = vsel %vm181_vm4, %v244_v61, 0 }
 0x4d6   :  { %735 = vmatpush.bf16.xpose.msra.mxu1 %v652_v62  ;;  %757 = vmatpush.bf16.xpose.msra.mxu2 %v652_v62 }
 0x4dd   :  { %2506 = vmatmul.msk.bf16.vlgmr.msra.gmra.mxu1 %vm181_vm4, %v2839_v0  ;;  %2511 = vmatmul.msk.bf16.vlgmr.msra.gmra.mxu2 %vm181_vm4, %v2840_v53 }
 0x4e5   :  { %2520 = vmatmul.msk.bf16.vlgmr.msra.gmra.mxu3 %vm181_vm4, %v244_v61  ;;  %2529 = vmatmul.msk.bf16.vlgmr.msrb.gmra.mxu0 %vm181_vm4, %v244_v61 }
 0x542   :  { %v593_v55 = vpop.f32.mrf.mxu1 }
 0x543   :  { %v619_v3 = vsel %vm181_vm4, %v593_v55, 0.0 }
 0x54a   :  { %v595_v1 = vpop.f32.mrf.mxu1  ;;  %v615_v2 = vpop.f32.mrf.mxu2 }
 0x54b   :  { %v620_v4 = vsel %vm181_vm4, %v615_v2, 0.0 }
 0x54c   :  { %v621_v5 = vadd.f32 %v620_v4, %v619_v3 }
 0x54e   :  { %622 = vst.msk [vmem:[#allocation2] sm:$0xff] %vm181_vm4, %v621_v5 }
 0x552   :  { %v617_v6 = vpop.f32.mrf.mxu2  ;;  %v688_v7 = vpop.f32.mrf.mxu0 }
 0x553   :  { %v689_v47 = vadd.f32 %v2906_v39, %v688_v7 }
 0x555   :  { %v831_v50 = vpack.c.bf16 %v689_v47, %v689_v47  ;;  %v998_v61 = vld [vmem:[#allocation2] sm:$0xff] }
 0x556   :  { %v1004_v53 = vadd.f32 %v3428_v56, %v998_v61  ;;  %v2847_v61 = vld [vmem:[%s3820_s16] sm:$0xff] }
 0x558   :  { %v663_v10 = vpop.f32.mrf.mxu3  ;;  %v1006_v55 = vadd.f32 %v1004_v53, %v3292_v60 }
 0x559   :  { %v664_v31 = vadd.f32 %v2907_v27, %v663_v10 }
 0x55a   :  { %v690_v11 = vpop.f32.mrf.mxu0  ;;  %v737_v12 = vpop.f32.mrf.mxu1  ;;  %v1010_v2 = vsel %vm181_vm4, %v1006_v55, 0.0 }
 0x55b   :  { %v738_v14 = vadd.f32 %v737_v12, %v703_v13  ;;  %v830_v43 = vpack.c.bf16 %v664_v31, %v664_v31 }
 0x55d   :  { %v832_v23 = vpack.c.bf16 %v738_v14, %v738_v14 }
 0x55f   :  { %v838_v30 = vunpack.c.l.b16 %v832_v23 }
 0x560   :  { %v665_v17 = vpop.f32.mrf.mxu3  ;;  %v759_v19 = vpop.f32.mrf.mxu2 }
 0x561   :  { %v760_v58 = vadd.f32 %v759_v19, %v713_v26 }
 0x562   :  { %v739_v21 = vpop.f32.mrf.mxu1  ;;  %v826_v22 = vpop.f32.mrf.mxu0 }
 0x563   :  { %v740_v24 = vadd.f32 %v739_v21, %v708_v20  ;;  %v827_v25 = vadd.f32 %v2908_v15, %v826_v22  ;;  %v834_v35 = vpack.c.bf16 %v760_v58, %v760_v58  ;;  %v2845_v58 = vld [vmem:[%s3816_s12] sm:$0xff] }
 0x565   :  { %v833_v9 = vpack.c.bf16 %v740_v24, %v740_v24  ;;  %v905_v28 = vpack.c.bf16 %v827_v25, %v827_v25  ;;  %v860_v44 = vunpack.c.l.b16 %v834_v35 }
 0x567   :  { %v839_v63 = vunpack.c.l.b16 %v833_v9  ;;  %v929_v57 = vsel %vm533_vm9, %v905_v28, 0  ;;  %v2846_v9 = vld [vmem:[%s3816_s12 + $0x8] sm:$0xff] }
 0x568   :  { %v761_v33 = vpop.f32.mrf.mxu2  ;;  %v801_v34 = vpop.f32.mrf.mxu3  ;;  %938 = vmatpush.bf16.msra.mxu0 %v929_v57 }
 0x569   :  { %v840_v36 = vpack.c.b16 %v839_v63, %v838_v30  ;;  %v762_v37 = vadd.f32 %v761_v33, %v718_v8  ;;  %v802_v38 = vadd.f32 %v2909_v29, %v801_v34 }
 0x56a   :  { %v828_v40 = vpop.f32.mrf.mxu0 }
 0x56b   :  { %v835_v41 = vpack.c.bf16 %v762_v37, %v762_v37  ;;  %v904_v42 = vpack.c.bf16 %v802_v38, %v802_v38  ;;  %852 = vmatpush.bf16.msrb.mxu1 %v840_v36 }
 0x56d   :  { %v861_v45 = vunpack.c.l.b16 %v835_v41  ;;  %v910_v46 = vsel %vm533_vm9, %v904_v42, 0 }
 0x56e   :  { %2530 = vmatmul.msk.bf16.vlgmr.msrb.gmra.mxu1 %vm464_vm10, %v830_v43  ;;  %919 = vmatpush.bf16.msrb.mxu3 %v910_v46 }
 0x56f   :  { %v862_v48 = vpack.c.b16 %v861_v45, %v860_v44  ;;  %966 = vmatpush.bf16.msra.mxu1 %v2845_v58  ;;  %v2913_v58 = vld [vmem:[%s3821_s17] ss:$0 sm:$0xff] }
 0x570   :  { %v803_v49 = vpop.f32.mrf.mxu3 }
 0x571   :  { %874 = vmatpush.bf16.msrb.mxu2 %v862_v48  ;;  %v3463_v49 = vld [vmem:[%s3856_s3 + $0x20] sm:$0xff] }
 0x574   :  { %2531 = vmatmul.msk.bf16.vlgmr.msrb.gmra.mxu2 %vm464_vm10, %v831_v50 }
 0x575   :  { %988 = vmatpush.bf16.msra.mxu2 %v2846_v9 }
 0x5eb   :  { %v854_v51 = vpop.f32.mrf.mxu1 }
 0x5ec   :  { %v880_v52 = vsel %vm503_vm11, %v854_v51, -inf }
 0x5ed   :  { %881 = vmax.xlane.f32.xlu2 %v880_v52 }
 0x5f3   :  { %v856_v54 = vpop.f32.mrf.mxu1 }
 0x5f4   :  { %v2848_v54 = vld [vmem:[%s3820_s16 + $0x8] sm:$0xff] }
 0x5f5   :  { %1094 = vmatpush.bf16.msra.mxu3 %v2848_v54 }
 0x5f7   :  { %v876_v62 = vpop.f32.mrf.mxu2 }
 0x5f8   :  { %v883_v0 = vsel %vm503_vm11, %v876_v62, -inf }
 0x5f9   :  { %884 = vmax.xlane.f32.xlu0 %v883_v0  ;;  %1095 = vmatpush.bf16.msra.mxu3 %v2847_v61  ;;  %v3517_v61 = vld [vmem:[%s3856_s3 + $0x28] sm:$0xff] }
 0x5ff   :  { %v878_v1 = vpop.f32.mrf.mxu2 }
 0x601   :  { %1011 = vadd.xlane.f32.xlu0 %v1010_v2 }
 0x660   :  { %v882_v3 = vpop.xlane.xlu2 %881 }
 0x661   :  { %v886_v4 = vsub.f32 %v854_v51, %v882_v3 }
 0x663   :  { %v888_v5 = vmul.f32 1.442695, %v886_v4 }
 0x665   :  { %2948 = vpow2.f32 %v888_v5 }
 0x66b   :  { %v2949_v6 = vpop.eup %2948 }
 0x66c   :  { %v885_v7 = vpop.xlane.xlu0 %884  ;;  %v892_v8 = vsel %vm503_vm11, %v2949_v6, 0.0 }
 0x66d   :  { %v887_v10 = vsub.f32 %v876_v62, %v885_v7  ;;  %893 = vadd.xlane.f32.xlu1 %v892_v8 }
 0x66f   :  { %v890_v11 = vmul.f32 1.442695, %v887_v10 }
 0x671   :  { %2950 = vpow2.f32 %v890_v11 }
 0x674   :  { %v1012_v12 = vpop.xlane.xlu0 %1011 }
 0x675   :  { %v1016_v13 = vmul.f32 %v1012_v12, %v3245_v32  ;;  %v2911_v12 = vld [vmem:[%s3818_s14] ss:$0 sm:$0xff] }
 0x677   :  { %v2951_v60 = vpop.eup %2950  ;;  %v3436_v14 = vsub.f32 %v1006_v55, %v1016_v13 }
 0x678   :  { %v895_v15 = vsel %vm503_vm11, %v2951_v60, 0.0 }
 0x679   :  { %896 = vadd.xlane.f32.xlu2 %v895_v15  ;;  %v1020_v17 = vmul.f32 %v3436_v14, %v3436_v14 }
 0x67b   :  { %v1022_v19 = vsel %vm181_vm4, %v1020_v17, 0.0  ;;  %v2912_v17 = vld [vmem:[%s3819_s15] ss:$0 sm:$0xff] }
 0x67c   :  { %1023 = vadd.xlane.f32.xlu1 %v1022_v19 }
 0x6e0   :  { %v894_v20 = vpop.xlane.xlu1 %893 }
 0x6e1   :  { %2952 = vrcp.f32 %v894_v20 }
 0x6e7   :  { %v2953_v21 = vpop.eup %2952 }
 0x6e8   :  { %v900_v22 = vmul.f32 %v2953_v21, %v2949_v6 }
 0x6ea   :  { %v902_v23 = vpack.c.bf16 %v900_v22, %v900_v22 }
 0x6ec   :  { %2532 = vmatmul.msk.bf16.vlgmr.msrb.gmra.mxu3 %vm503_vm11, %v902_v23  ;;  %v897_v24 = vpop.xlane.xlu2 %896 }
 0x6ed   :  { %2954 = vrcp.f32 %v897_v24 }
 0x6ef   :  { %v1024_v50 = vpop.xlane.xlu1 %1023 }
 0x6f0   :  { %v1028_v51 = vmul.f32 %v1024_v50, %v3245_v32  ;;  %v3510_v50 = vld [vmem:[%s3823_s19] ss:$0 sm:$0xff] }
 0x6f2   :  { %v1030_v52 = vadd.f32 1e-12, %v1028_v51 }
 0x6f3   :  { %v2955_v25 = vpop.eup %2954 }
 0x6f4   :  { %v901_v26 = vmul.f32 %v2955_v25, %v2951_v60  ;;  %2956 = vrsqrt.f32 %v1030_v52  ;;  %vm1038_vm0 = vweird.f32 %v1030_v52  ;;  %v2851_v25 = vld [vmem:[%s3822_s18 + $0x10] sm:$0xff] }
 0x6f6   :  { %v903_v27 = vpack.c.bf16 %v901_v26, %v901_v26  ;;  %v2850_v26 = vld [vmem:[%s3822_s18 + $0x8] sm:$0xff] }
 0x6f8   :  { %2533 = vmatmul.msk.bf16.vlgmr.msra.gmra.mxu0 %vm503_vm11, %v903_v27  ;;  %v2849_v27 = vld [vmem:[%s3822_s18] sm:$0xff] }
 0x76f   :  { %v921_v28 = vpop.f32.mrf.mxu3 }
 0x770   :  { %v944_v29 = vpack.c.bf16 %v921_v28, %v921_v28 }
 0x772   :  { %2538 = vmatmul.msk.bf16.vlgmr.msra.gmra.mxu1 %vm464_vm10, %v944_v29 }
 0x775   :  { %v940_v30 = vpop.f32.mrf.mxu0 }
 0x776   :  { %v945_v63 = vpack.c.bf16 %v940_v30, %v940_v30 }
 0x777   :  { %v923_v57 = vpop.f32.mrf.mxu3 }
 0x778   :  { %2543 = vmatmul.msk.bf16.vlgmr.msra.gmra.mxu2 %vm464_vm10, %v945_v63 }
 0x77d   :  { %v942_v31 = vpop.f32.mrf.mxu0 }
 0x7ef   :  { %v968_v33 = vpop.f32.mrf.mxu1 }
 0x7f0   :  { %v994_v36 = vsel %vm181_vm4, %v968_v33, 0.0 }
 0x7f7   :  { %v970_v34 = vpop.f32.mrf.mxu1 }
 0x7fb   :  { %v990_v35 = vpop.f32.mrf.mxu2 }
 0x7fc   :  { %v995_v37 = vsel %vm181_vm4, %v990_v35, 0.0 }
 0x7fd   :  { %v996_v38 = vadd.f32 %v995_v37, %v994_v36 }
 0x7ff   :  { %997 = vst.msk [vmem:[#allocation2 + $0x8] sm:$0xff] %vm181_vm4, %v996_v38 }
 0x803   :  { %v992_v39 = vpop.f32.mrf.mxu2 }
 0x806   :  { %v999_v40 = vld [vmem:[#allocation2 + $0x8] sm:$0xff] }
 0x807   :  { %v1005_v41 = vadd.f32 %v3428_v56, %v999_v40  ;;  %v2957_v56 = vpop.eup %2956 }
 0x808   :  { %v1033_v62 = vmul.f32 %v2957_v56, %v1030_v52  ;;  %vm1039_vm15 = vweird.f32 %v2957_v56 }
 0x809   :  { %v1007_v42 = vadd.f32 %v1005_v41, %v3388_v59  ;;  %v3469_v59 = vld [vmem:[%s3856_s3 + $0x38] sm:$0xff]  ;;  %vm1040_vm1 = vmor %vm1038_vm0, %vm1039_vm15 }
 0x80a   :  { %v1034_v0 = vmul.f32 %v2957_v56, %v1033_v62 }
 0x80b   :  { %v1013_v43 = vsel %vm181_vm4, %v1007_v42, 0.0 }
 0x80c   :  { %1014 = vadd.xlane.f32.xlu2 %v1013_v43  ;;  %v1035_v2 = vmul.f32 0.5, %v1034_v0 }
 0x80e   :  { %v1036_v3 = vsub.f32 1.5, %v1035_v2  ;;  %v3525_v2 = vld [vmem:[%s3856_s3 + $0x30] sm:$0xff] }
 0x810   :  { %v1037_v5 = vmul.f32 %v2957_v56, %v1036_v3  ;;  %v2854_v3 = vld [vmem:[%s3858_s2 + $0x28] sm:$0xff] }
 0x811   :  { %1274 = vmatpush.bf16.msrb.mxu1 %v2854_v3 }
 0x812   :  { %v1041_v8 = vsel %vm1040_vm1, %v2957_v56, %v1037_v5  ;;  %v2853_v5 = vld [vmem:[%s3858_s2 + $0x20] sm:$0xff] }
 0x813   :  { %v1052_v13 = vmul.f32 %v1041_v8, %v3436_v14  ;;  %v2852_v14 = vld [vmem:[%s3822_s18 + $0x18] sm:$0xff] }
 0x814   :  { %1165 = vmatpush.bf16.msrb.mxu0 %v2852_v14 }
 0x815   :  { %v1057_v19 = vmul.f32 %v2911_v12, %v1052_v13  ;;  %1275 = vmatpush.bf16.msrb.mxu1 %v2853_v5  ;;  %v2859_v13 = vld [vmem:[%s3859_s29 + $0x20] sm:$0xff] }
 0x817   :  { %v1062_v22 = vadd.f32 %v2912_v17, %v1057_v19 }
 0x818   :  { %1166 = vmatpush.bf16.msrb.mxu0 %v2851_v25  ;;  %v3561_v25 = vld [vmem:[%s3825_s21] ss:$0 sm:$0xff] }
 0x81c   :  { %1167 = vmatpush.bf16.msrb.mxu0 %v2850_v26 }
 0x820   :  { %1168 = vmatpush.bf16.msrb.mxu0 %v2849_v27 }
 0x87f   :  { %v1015_v44 = vpop.xlane.xlu2 %1014 }
 0x880   :  { %v1017_v45 = vmul.f32 %v1015_v44, %v3245_v32 }
 0x882   :  { %v1019_v46 = vsub.f32 %v1007_v42, %v1017_v45 }
 0x884   :  { %v1021_v47 = vmul.f32 %v1019_v46, %v1019_v46 }
 0x886   :  { %v1025_v48 = vsel %vm181_vm4, %v1021_v47, 0.0 }
 0x887   :  { %1026 = vadd.xlane.f32.xlu0 %v1025_v48 }
 0x89b   :  { %1318 = vperm.xlu0 %2897, %v3463_v49  }
 0x8a3   :  { %1333 = vperm.xlu0 %2897, %v3469_v59  }
 0x8fa   :  { %v1027_v53 = vpop.xlane.xlu0 %1026 }
 0x8fb   :  { %v1029_v55 = vmul.f32 %v1027_v53, %v3245_v32 }
 0x8fd   :  { %v1031_v1 = vadd.f32 1e-12, %v1029_v55 }
 0x8ff   :  { %2958 = vrsqrt.f32 %v1031_v1  ;;  %vm1048_vm3 = vweird.f32 %v1031_v1 }
 0x905   :  { %v2959_v4 = vpop.eup %2958 }
 0x906   :  { %v1043_v6 = vmul.f32 %v2959_v4, %v1031_v1  ;;  %vm1049_vm2 = vweird.f32 %v2959_v4 }
 0x907   :  { %vm1050_vm5 = vmor %vm1048_vm3, %vm1049_vm2 }
 0x908   :  { %v1044_v7 = vmul.f32 %v2959_v4, %v1043_v6  ;;  %v2855_v6 = vld [vmem:[%s3858_s2 + $0x30] sm:$0xff] }
 0x90a   :  { %v1045_v10 = vmul.f32 0.5, %v1044_v7 }
 0x90c   :  { %v1046_v11 = vsub.f32 1.5, %v1045_v10 }
 0x90e   :  { %v1047_v60 = vmul.f32 %v2959_v4, %v1046_v11  ;;  %v2860_v11 = vld [vmem:[%s3859_s29 + $0x28] sm:$0xff] }
 0x90f   :  { %1416 = vmatpush.bf16.msra.mxu1 %v2860_v11 }
 0x910   :  { %v1051_v15 = vsel %vm1050_vm5, %v2959_v4, %v1047_v60  ;;  %v2856_v4 = vld [vmem:[%s3858_s2 + $0x38] sm:$0xff]  ;;  %v2861_v60 = vld [vmem:[%s3859_s29 + $0x30] sm:$0xff] }
 0x911   :  { %v1053_v20 = vmul.f32 %v1051_v15, %v1019_v46  ;;  %1299 = vmatpush.bf16.msrb.mxu2 %v2856_v4 }
 0x913   :  { %v1058_v21 = vmul.f32 %v2911_v12, %v1053_v20  ;;  %v2862_v12 = vld [vmem:[%s3859_s29 + $0x38] sm:$0xff]  ;;  %1417 = vmatpush.bf16.msra.mxu1 %v2859_v13 }
 0x915   :  { %v3487_v23 = vadd.f32 %v2912_v17, %v1058_v21  ;;  %1300 = vmatpush.bf16.msrb.mxu2 %v2855_v6 }
 0x917   :  { %v1064_v24 = vpack.c.bf16 %v3487_v23, %v1062_v22 }
 0x919   :  { %2552 = vmatmul.msk.bf16.vlgmr.msra.gmra.mxu3 %vm181_vm4, %v1064_v24  ;;  %1441 = vmatpush.bf16.msra.mxu2 %v2862_v12  ;;  %v3556_v24 = vld [vmem:[%s3824_s20] ss:$0 sm:$0xff] }
 0x91d   :  { %1442 = vmatpush.bf16.msra.mxu2 %v2861_v60 }
 0x99c   :  { %v1097_v9 = vpop.f32.mrf.mxu3 }
 0x99d   :  { %v1098_v28 = vadd.f32 %v2913_v58, %v1097_v9 }
 0x99f   :  { %v1104_v29 = vmul.f32 0.044715, %v1098_v28  ;;  %v1102_v43 = vmul.f32 0.5, %v1098_v28 }
 0x9a1   :  { %v1106_v30 = vmul.f32 %v1104_v29, %v1098_v28  ;;  %v2857_v29 = vld [vmem:[%s3862_s0 + $0x10] sm:$0xff] }
 0x9a3   :  { %v1108_v63 = vmul.f32 %v1106_v30, %v1098_v28  ;;  %v2858_v30 = vld [vmem:[%s3862_s0 + $0x18] sm:$0xff] }
 0x9a4   :  { %v1099_v57 = vpop.f32.mrf.mxu3 }
 0x9a5   :  { %v1110_v31 = vadd.f32 %v1108_v63, %v1098_v28  ;;  %v1100_v33 = vadd.f32 %v2913_v58, %v1099_v57 }
 0x9a7   :  { %v1105_v34 = vmul.f32 0.044715, %v1100_v33  ;;  %v1112_v35 = vmul.f32 0.7978846, %v1110_v31  ;;  %v1103_v44 = vmul.f32 0.5, %v1100_v33  ;;  %v1319_v31 = vpop.permute.xlu0 %1318 }
 0x9a9   :  { %v1107_v36 = vmul.f32 %v1105_v34, %v1100_v33  ;;  %2960 = vtanh.f32 %v1112_v35 }
 0x9ab   :  { %v1109_v37 = vmul.f32 %v1107_v36, %v1100_v33 }
 0x9ad   :  { %v1111_v38 = vadd.f32 %v1109_v37, %v1100_v33 }
 0x9af   :  { %v1113_v39 = vmul.f32 0.7978846, %v1111_v38  ;;  %v2961_v40 = vpop.eup %2960  ;;  %v2919_v38 = vld [vmem:[%s3863_s7 + $0x2] ss:$0 sm:$0xff] }
 0x9b0   :  { %v1116_v41 = vadd.f32 1.0, %v2961_v40 }
 0x9b1   :  { %2962 = vtanh.f32 %v1113_v39 }
 0x9b2   :  { %v1118_v46 = vmul.f32 %v1116_v41, %v1102_v43  ;;  %v1334_v41 = vpop.permute.xlu0 %1333 }
 0x9b7   :  { %v2963_v42 = vpop.eup %2962 }
 0x9b8   :  { %v1117_v45 = vadd.f32 1.0, %v2963_v42 }
 0x9ba   :  { %v1119_v47 = vmul.f32 %v1117_v45, %v1103_v44 }
 0x9bc   :  { %v1120_v48 = vpack.c.bf16 %v1119_v47, %v1118_v46  ;;  %v2918_v47 = vld [vmem:[%s3864_s30 + $0x3] ss:$0 sm:$0xff] }
 0x9be   :  { %2569 = vmatmul.msk.bf16.vlgmr.msrb.gmra.mxu0 %vm1157_vm6, %v1120_v48 }
 0xa3b   :  { %v1170_v51 = vpop.f32.mrf.mxu0 }
 0xa3c   :  { %v1171_v52 = vadd.f32 %v3510_v50, %v1170_v51 }
 0xa3e   :  { %v1175_v54 = vadd.f32 %v1171_v52, %v1062_v22 }
 0xa40   :  { %v1179_v56 = vsel %vm181_vm4, %v1175_v54, 0.0 }
 0xa41   :  { %1180 = vadd.xlane.f32.xlu2 %v1179_v56 }
 0xa43   :  { %v1172_v63 = vpop.f32.mrf.mxu0 }
 0xa59   :  { %1323 = vperm.xlu2 %2898, %v3517_v61  }
 0xab4   :  { %v1181_v62 = vpop.xlane.xlu2 %1180 }
 0xab5   :  { %v1185_v0 = vmul.f32 %v1181_v62, %v3245_v32 }
 0xab7   :  { %v1187_v53 = vsub.f32 %v1175_v54, %v1185_v0  ;;  %v2920_v54 = vld [vmem:[%s3863_s7 + $0x3] ss:$0 sm:$0xff] }
 0xab9   :  { %v1189_v55 = vmul.f32 %v1187_v53, %v1187_v53 }
 0xabb   :  { %v1191_v1 = vsel %vm181_vm4, %v1189_v55, 0.0 }
 0xabc   :  { %1192 = vadd.xlane.f32.xlu1 %v1191_v1  ;;  %v1324_v56 = vpop.permute.xlu2 %1323 }
 0xad5   :  { %1328 = vperm.xlu1 %2899, %v3525_v2  }
 0xb2f   :  { %v1193_v7 = vpop.xlane.xlu1 %1192 }
 0xb30   :  { %v1197_v8 = vmul.f32 %v1193_v7, %v3245_v32 }
 0xb32   :  { %v1199_v10 = vadd.f32 1e-12, %v1197_v8  ;;  %v2917_v8 = vld [vmem:[%s3864_s30 + $0x2] ss:$0 sm:$0xff] }
 0xb34   :  { %2964 = vrsqrt.f32 %v1199_v10  ;;  %vm1207_vm8 = vweird.f32 %v1199_v10 }
 0xb3a   :  { %v2965_v15 = vpop.eup %2964 }
 0xb3b   :  { %v1202_v17 = vmul.f32 %v2965_v15, %v1199_v10  ;;  %vm1208_vm7 = vweird.f32 %v2965_v15 }
 0xb3c   :  { %vm1209_vm12 = vmor %vm1207_vm8, %vm1208_vm7 }
 0xb3d   :  { %v1203_v19 = vmul.f32 %v2965_v15, %v1202_v17 }
 0xb3f   :  { %v1204_v20 = vmul.f32 0.5, %v1203_v19 }
 0xb41   :  { %v1205_v21 = vsub.f32 1.5, %v1204_v20 }
 0xb43   :  { %v1206_v22 = vmul.f32 %v2965_v15, %v1205_v21 }
 0xb45   :  { %v1210_v14 = vsel %vm1209_vm12, %v2965_v15, %v1206_v22 }
 0xb46   :  { %v1221_v26 = vmul.f32 %v1210_v14, %v1187_v53 }
 0xb47   :  { %v1329_v36 = vpop.permute.xlu1 %1328 }
 0xb48   :  { %v1226_v27 = vmul.f32 %v3556_v24, %v1221_v26  ;;  %v1173_v26 = vadd.f32 %v3510_v50, %v1172_v63 }
 0xb4a   :  { %v3565_v58 = vadd.f32 %v3561_v25, %v1226_v27 }
 0xb4c   :  { %v1233_v9 = vpack.c.bf16 %v3565_v58, %v3565_v58 }
 0xb4e   :  { %2588 = vmatmul.msk.bf16.vlgmr.msrb.gmra.mxu1 %vm181_vm4, %v1233_v9  ;;  %2597 = vmatmul.msk.bf16.vlgmr.msrb.gmra.mxu2 %vm181_vm4, %v1233_v9  ;;  %v1266_v28 = vsel %vm181_vm4, %v1233_v9, 0 }
 0xb4f   :  { %1351 = vmatpush.bf16.xpose.msrb.mxu3 %v1266_v28  ;;  %1373 = vmatpush.bf16.xpose.msra.mxu0 %v1266_v28 }
 0xb56   :  { %2610 = vmatmul.msk.bf16.vlgmr.msrb.gmra.mxu3 %vm181_vm4, %v2857_v29  ;;  %2615 = vmatmul.msk.bf16.vlgmr.msra.gmra.mxu0 %vm181_vm4, %v2858_v30 }
 0xb5e   :  { %2634 = vmatmul.msk.bf16.vlgmr.msra.gmra.mxu1 %vm181_vm4, %v1233_v9  ;;  %2643 = vmatmul.msk.bf16.vlgmr.msra.gmra.mxu2 %vm181_vm4, %v1233_v9  ;;  %v1176_v9 = vadd.f32 %v1173_v26, %v3487_v23 }
 0xb60   :  { %v1182_v29 = vsel %vm181_vm4, %v1176_v9, 0.0 }
 0xbcb   :  { %v1277_v57 = vpop.f32.mrf.mxu1 }
 0xbcc   :  { %v1278_v19 = vadd.f32 %v2917_v8, %v1277_v57 }
 0xbce   :  { %v1448_v22 = vpack.c.bf16 %v1278_v19, %v1278_v19 }
 0xbd1   :  { %v1302_v33 = vpop.f32.mrf.mxu2 }
 0xbd2   :  { %v1303_v55 = vadd.f32 %v2918_v47, %v1302_v33  ;;  %v2866_v47 = vld [vmem:[%s3858_s2 + $0x28] sm:$0xff] }
 0xbd3   :  { %v1279_v34 = vpop.f32.mrf.mxu1  ;;  %v1375_v35 = vpop.f32.mrf.mxu0 }
 0xbd4   :  { %v1376_v37 = vadd.f32 %v1375_v35, %v1329_v36  ;;  %v1449_v13 = vpack.c.bf16 %v1303_v55, %v1303_v55 }
 0xbd6   :  { %v1452_v44 = vpack.c.bf16 %v1376_v37, %v1376_v37 }
 0xbd8   :  { %v1478_v62 = vunpack.c.l.b16 %v1452_v44 }
 0xbd9   :  { %v1304_v39 = vpop.f32.mrf.mxu2  ;;  %v1353_v40 = vpop.f32.mrf.mxu3 }
 0xbda   :  { %v1354_v48 = vadd.f32 %v1353_v40, %v1319_v31 }
 0xbdb   :  { %v1377_v42 = vpop.f32.mrf.mxu0  ;;  %v1419_v43 = vpop.f32.mrf.mxu1 }
 0xbdc   :  { %v1378_v45 = vadd.f32 %v1377_v42, %v1334_v41  ;;  %v1420_v46 = vadd.f32 %v2919_v38, %v1419_v43  ;;  %v1450_v4 = vpack.c.bf16 %v1354_v48, %v1354_v48  ;;  %v2868_v48 = vld [vmem:[%s3858_s2 + $0x38] sm:$0xff] }
 0xbde   :  { %v1453_v51 = vpack.c.bf16 %v1378_v45, %v1378_v45  ;;  %v1522_v52 = vpack.c.bf16 %v1420_v46, %v1420_v46  ;;  %v1456_v60 = vunpack.c.l.b16 %v1450_v4  ;;  %v2873_v4 = vld [vmem:[%s3859_s29 + $0x30] sm:$0xff] }
 0xbe0   :  { %v1479_v0 = vunpack.c.l.b16 %v1453_v51  ;;  %v1528_v53 = vsel %vm533_vm9, %v1522_v52, 0  ;;  %v2863_v52 = vld [vmem:[%s3816_s12 + $0x10] sm:$0xff] }
 0xbe1   :  { %v1355_v1 = vpop.f32.mrf.mxu3  ;;  %v1444_v3 = vpop.f32.mrf.mxu2  ;;  %1537 = vmatpush.bf16.msrb.mxu1 %v1528_v53  ;;  %v2874_v53 = vld [vmem:[%s3859_s29 + $0x38] sm:$0xff] }
 0xbe2   :  { %v1480_v5 = vpack.c.b16 %v1479_v0, %v1478_v62  ;;  %v1356_v6 = vadd.f32 %v1355_v1, %v1324_v56  ;;  %v1445_v7 = vadd.f32 %v2920_v54, %v1444_v3  ;;  %v2864_v54 = vld [vmem:[%s3816_s12 + $0x18] sm:$0xff]  ;;  %v2872_v1 = vld [vmem:[%s3859_s29 + $0x28] sm:$0xff] }
 0xbe3   :  { %v1421_v10 = vpop.f32.mrf.mxu1 }
 0xbe4   :  { %v1451_v11 = vpack.c.bf16 %v1356_v6, %v1356_v6  ;;  %v1523_v12 = vpack.c.bf16 %v1445_v7, %v1445_v7  ;;  %1492 = vmatpush.bf16.msrb.mxu0 %v1480_v5  ;;  %v2871_v6 = vld [vmem:[%s3859_s29 + $0x20] sm:$0xff] }
 0xbe5   :  { %1654 = vmatpush.bf16.msra.mxu1 %v2866_v47 }
 0xbe6   :  { %v1457_v15 = vunpack.c.l.b16 %v1451_v11  ;;  %v1547_v17 = vsel %vm533_vm9, %v1523_v12, 0 }
 0xbe7   :  { %2645 = vmatmul.msk.bf16.vlgmr.msrb.gmra.mxu0 %vm464_vm10, %v1449_v13  ;;  %1556 = vmatpush.bf16.msrb.mxu2 %v1547_v17 }
 0xbe8   :  { %v1458_v20 = vpack.c.b16 %v1457_v15, %v1456_v60  ;;  %1607 = vmatpush.bf16.msra.mxu0 %v2864_v54 }
 0xbe9   :  { %v1446_v21 = vpop.f32.mrf.mxu2 }
 0xbea   :  { %1470 = vmatpush.bf16.msra.mxu3 %v1458_v20 }
 0xbeb   :  { %1679 = vmatpush.bf16.msra.mxu2 %v2868_v48 }
 0xbed   :  { %2644 = vmatmul.msk.bf16.vlgmr.msra.gmra.mxu3 %vm464_vm10, %v1448_v22 }
 0xbee   :  { %1585 = vmatpush.bf16.msrb.mxu3 %v2863_v52 }
 0xc64   :  { %v1494_v14 = vpop.f32.mrf.mxu0 }
 0xc65   :  { %v1501_v27 = vsel %vm503_vm11, %v1494_v14, -inf }
 0xc66   :  { %1502 = vmax.xlane.f32.xlu0 %v1501_v27 }
 0xc6c   :  { %v1496_v28 = vpop.f32.mrf.mxu0 }
 0xc6d   :  { %v2869_v28 = vld [vmem:[%s3862_s0 + $0x10] sm:$0xff] }
 0xc6e   :  { %1183 = vadd.xlane.f32.xlu0 %v1182_v29 }
 0xc70   :  { %v1472_v30 = vpop.f32.mrf.mxu3 }
 0xc71   :  { %v1498_v57 = vsel %vm503_vm11, %v1472_v30, -inf }
 0xc72   :  { %1499 = vmax.xlane.f32.xlu2 %v1498_v57 }
 0xc78   :  { %v1474_v31 = vpop.f32.mrf.mxu3 }
 0xc79   :  { %v2923_v31 = vld [vmem:[%s3863_s7 + $0x2] ss:$0 sm:$0xff] }
 0xc82   :  { %1701 = vperm.xlu0 %2897, %v3517_v61  }
 0xc8a   :  { %1711 = vperm.xlu0 %2897, %v3469_v59  }
 0xcd9   :  { %v1503_v33 = vpop.xlane.xlu0 %1502 }
 0xcda   :  { %v1505_v50 = vsub.f32 %v1494_v14, %v1503_v33 }
 0xcdc   :  { %v1508_v63 = vmul.f32 1.442695, %v1505_v50 }
 0xcde   :  { %2966 = vpow2.f32 %v1508_v63 }
 0xce1   :  { %v1184_v38 = vpop.xlane.xlu0 %1183 }
 0xce2   :  { %v1186_v39 = vmul.f32 %v1184_v38, %v3245_v32 }
 0xce4   :  { %v2967_v34 = vpop.eup %2966  ;;  %v1188_v41 = vsub.f32 %v1176_v9, %v1186_v39  ;;  %v2870_v9 = vld [vmem:[%s3862_s0 + $0x18] sm:$0xff] }
 0xce5   :  { %v1500_v35 = vpop.xlane.xlu2 %1499  ;;  %v1513_v23 = vsel %vm503_vm11, %v2967_v34, 0.0 }
 0xce6   :  { %v1504_v36 = vsub.f32 %v1472_v30, %v1500_v35  ;;  %1514 = vadd.xlane.f32.xlu2 %v1513_v23  ;;  %v1190_v59 = vmul.f32 %v1188_v41, %v1188_v41  ;;  %v2924_v35 = vld [vmem:[%s3863_s7 + $0x3] ss:$0 sm:$0xff] }
 0xce8   :  { %v1506_v37 = vmul.f32 1.442695, %v1504_v36  ;;  %v1194_v42 = vsel %vm181_vm4, %v1190_v59, 0.0 }
 0xcea   :  { %2968 = vpow2.f32 %v1506_v37 }
 0xcf0   :  { %v2969_v40 = vpop.eup %2968 }
 0xcf1   :  { %v1510_v61 = vsel %vm503_vm11, %v2969_v40, 0.0 }
 0xcf2   :  { %1511 = vadd.xlane.f32.xlu1 %v1510_v61 }
 0xcfa   :  { %1195 = vadd.xlane.f32.xlu1 %v1194_v42 }
 0xcfe   :  { %1696 = vperm.xlu2 %2898, %v3463_v49   ;;  %v2865_v49 = vld [vmem:[%s3858_s2 + $0x20] sm:$0xff] }
 0xcff   :  { %1655 = vmatpush.bf16.msra.mxu1 %v2865_v49 }
 0xd13   :  { %1706 = vperm.xlu1 %2899, %v3525_v2   ;;  %v2867_v2 = vld [vmem:[%s3858_s2 + $0x30] sm:$0xff] }
 0xd14   :  { %1680 = vmatpush.bf16.msra.mxu2 %v2867_v2 }
 0xd59   :  { %v1515_v43 = vpop.xlane.xlu2 %1514 }
 0xd5a   :  { %2970 = vrcp.f32 %v1515_v43 }
 0xd60   :  { %v2971_v44 = vpop.eup %2970 }
 0xd61   :  { %v1519_v45 = vmul.f32 %v2971_v44, %v2967_v34 }
 0xd63   :  { %v1521_v46 = vpack.c.bf16 %v1519_v45, %v1519_v45  ;;  %v1702_v45 = vpop.permute.xlu0 %1701 }
 0xd65   :  { %v1512_v51 = vpop.xlane.xlu1 %1511  ;;  %2647 = vmatmul.msk.bf16.vlgmr.msrb.gmra.mxu2 %vm503_vm11, %v1521_v46 }
 0xd66   :  { %2972 = vrcp.f32 %v1512_v51  ;;  %1817 = vmatpush.bf16.msrb.mxu2 %v2874_v53 }
 0xd6a   :  { %1818 = vmatpush.bf16.msrb.mxu2 %v2873_v4 }
 0xd6b   :  { %v1712_v2 = vpop.permute.xlu0 %1711 }
 0xd6c   :  { %v2973_v56 = vpop.eup %2972 }
 0xd6d   :  { %v1518_v62 = vmul.f32 %v2973_v56, %v2969_v40  ;;  %v1196_v0 = vpop.xlane.xlu1 %1195 }
 0xd6e   :  { %v1198_v55 = vmul.f32 %v1196_v0, %v3245_v32 }
 0xd6f   :  { %v1520_v3 = vpack.c.bf16 %v1518_v62, %v1518_v62  ;;  %v2922_v62 = vld [vmem:[%s3864_s30 + $0x3] ss:$0 sm:$0xff] }
 0xd70   :  { %v1200_v5 = vadd.f32 1e-12, %v1198_v55 }
 0xd71   :  { %2646 = vmatmul.msk.bf16.vlgmr.msrb.gmra.mxu1 %vm503_vm11, %v1520_v3 }
 0xd72   :  { %2974 = vrsqrt.f32 %v1200_v5  ;;  %1792 = vmatpush.bf16.msrb.mxu1 %v2872_v1  ;;  %vm1217_vm14 = vweird.f32 %v1200_v5 }
 0xd76   :  { %1793 = vmatpush.bf16.msrb.mxu1 %v2871_v6 }
 0xd78   :  { %v2975_v7 = vpop.eup %2974 }
 0xd79   :  { %v1212_v8 = vmul.f32 %v2975_v7, %v1200_v5  ;;  %vm1218_vm13 = vweird.f32 %v2975_v7  ;;  %v1697_v5 = vpop.permute.xlu2 %1696 }
 0xd7a   :  { %vm1219_vm15 = vmor %vm1217_vm14, %vm1218_vm13  ;;  %vm2250_vm13 = vcmask 1041409   ;;  %vm2319_vm14 = vcmask 9216  }
 0xd7b   :  { %v1213_v10 = vmul.f32 %v2975_v7, %v1212_v8 }
 0xd7d   :  { %v1214_v11 = vmul.f32 0.5, %v1213_v10 }
 0xd7f   :  { %v1215_v12 = vsub.f32 1.5, %v1214_v11 }
 0xd81   :  { %v1216_v13 = vmul.f32 %v2975_v7, %v1215_v12  ;;  %v2921_v12 = vld [vmem:[%s3864_s30 + $0x2] ss:$0 sm:$0xff] }
 0xd83   :  { %v1220_v60 = vsel %vm1219_vm15, %v2975_v7, %v1216_v13 }
 0xd84   :  { %v1222_v15 = vmul.f32 %v1220_v60, %v1188_v41 }
 0xd85   :  { %v1707_v48 = vpop.permute.xlu1 %1706 }
 0xd86   :  { %v1227_v17 = vmul.f32 %v3556_v24, %v1222_v15 }
 0xd88   :  { %v3646_v19 = vadd.f32 %v3561_v25, %v1227_v17 }
 0xd8a   :  { %v1234_v20 = vpack.c.bf16 %v3646_v19, %v3646_v19 }
 0xd8c   :  { %2680 = vmatmul.msk.bf16.vlgmr.msra.gmra.mxu1 %vm181_vm4, %v1234_v20  ;;  %2689 = vmatmul.msk.bf16.vlgmr.msra.gmra.mxu2 %vm181_vm4, %v1234_v20  ;;  %v1646_v21 = vsel %vm181_vm4, %v1234_v20, 0 }
 0xd8d   :  { %1729 = vmatpush.bf16.xpose.msra.mxu3 %v1646_v21  ;;  %1751 = vmatpush.bf16.xpose.msrb.mxu0 %v1646_v21 }
 0xd9c   :  { %2726 = vmatmul.msk.bf16.vlgmr.msrb.gmra.mxu1 %vm181_vm4, %v1234_v20  ;;  %2735 = vmatmul.msk.bf16.vlgmr.msrb.gmra.mxu2 %vm181_vm4, %v1234_v20 }
 0xde8   :  { %v1558_v22 = vpop.f32.mrf.mxu2 }
 0xde9   :  { %v1563_v24 = vpack.c.bf16 %v1558_v22, %v1558_v22  ;;  %v3687_v22 = vld [vmem:[%s3817_s13 + $0x1] ss:$0 sm:$0xff] }
 0xdeb   :  { %2661 = vmatmul.msk.bf16.vlgmr.msra.gmra.mxu0 %vm464_vm10, %v1563_v24 }
 0xdee   :  { %v1539_v25 = vpop.f32.mrf.mxu1 }
 0xdef   :  { %v1562_v14 = vpack.c.bf16 %v1539_v25, %v1539_v25 }
 0xdf0   :  { %v1560_v26 = vpop.f32.mrf.mxu2 }
 0xdf1   :  { %2656 = vmatmul.msk.bf16.vlgmr.msrb.gmra.mxu3 %vm464_vm10, %v1562_v14 }
 0xdf6   :  { %v1541_v27 = vpop.f32.mrf.mxu1 }
 0xdfb   :  { %2707 = vmatmul.msk.bf16.vlgmr.msrb.gmra.mxu0 %vm181_vm4, %v2870_v9 }
 0xe01   :  { %2702 = vmatmul.msk.bf16.vlgmr.msra.gmra.mxu3 %vm181_vm4, %v2869_v28 }
 0xe09   :  { %v1657_v29 = vpop.f32.mrf.mxu1 }
 0xe0a   :  { %v1658_v17 = vadd.f32 %v2921_v12, %v1657_v29 }
 0xe0c   :  { %v1824_v21 = vpack.c.bf16 %v1658_v17, %v1658_v17 }
 0xe0f   :  { %v1682_v30 = vpop.f32.mrf.mxu2 }
 0xe10   :  { %v1683_v3 = vadd.f32 %v2922_v62, %v1682_v30 }
 0xe11   :  { %v1659_v57 = vpop.f32.mrf.mxu1 }
 0xe12   :  { %v1825_v7 = vpack.c.bf16 %v1683_v3, %v1683_v3 }
 0xe17   :  { %v1684_v33 = vpop.f32.mrf.mxu2 }
 0xe19   :  { %v1795_v50 = vpop.f32.mrf.mxu1 }
 0xe1a   :  { %v1796_v63 = vadd.f32 %v2923_v31, %v1795_v50 }
 0xe1c   :  { %v1898_v34 = vpack.c.bf16 %v1796_v63, %v1796_v63 }
 0xe1e   :  { %v1904_v23 = vsel %vm533_vm9, %v1898_v34, 0 }
 0xe1f   :  { %v1820_v36 = vpop.f32.mrf.mxu2  ;;  %1913 = vmatpush.bf16.msra.mxu1 %v1904_v23 }
 0xe20   :  { %v1821_v37 = vadd.f32 %v2924_v35, %v1820_v36 }
 0xe21   :  { %v1797_v38 = vpop.f32.mrf.mxu1 }
 0xe22   :  { %v1899_v39 = vpack.c.bf16 %v1821_v37, %v1821_v37 }
 0xe24   :  { %v1923_v40 = vsel %vm533_vm9, %v1899_v39, 0 }
 0xe25   :  { %1932 = vmatpush.bf16.msra.mxu2 %v1923_v40 }
 0xe27   :  { %v1822_v41 = vpop.f32.mrf.mxu2 }
 0xe68   :  { %v1609_v61 = vpop.f32.mrf.mxu0 }
 0xe69   :  { %v1614_v43 = vsel %vm181_vm4, %v1609_v61, 0.0 }
 0xe70   :  { %v1611_v59 = vpop.f32.mrf.mxu0 }
 0xe74   :  { %v1587_v42 = vpop.f32.mrf.mxu3 }
 0xe75   :  { %v1613_v44 = vsel %vm181_vm4, %v1587_v42, 0.0 }
 0xe76   :  { %v1615_v46 = vadd.f32 %v1614_v43, %v1613_v44 }
 0xe78   :  { %1616 = vst.msk [vmem:[#allocation2] sm:$0xff] %vm181_vm4, %v1615_v46  ;;  %v1753_v47 = vpop.f32.mrf.mxu0 }
 0xe79   :  { %v1754_v49 = vadd.f32 %v1753_v47, %v1707_v48 }
 0xe7b   :  { %v1828_v54 = vpack.c.bf16 %v1754_v49, %v1754_v49  ;;  %v2875_v49 = vld [vmem:[%s3816_s12 + $0x10] sm:$0xff] }
 0xe7c   :  { %v1589_v51 = vpop.f32.mrf.mxu3 }
 0xe7d   :  { %v1854_v55 = vunpack.c.l.b16 %v1828_v54  ;;  %v2876_v51 = vld [vmem:[%s3816_s12 + $0x18] sm:$0xff] }
 0xe7f   :  { %v1992_v24 = vld [vmem:[#allocation2] sm:$0xff] }
 0xe80   :  { %v1755_v52 = vpop.f32.mrf.mxu0  ;;  %v1999_v26 = vadd.f32 %v3687_v22, %v1992_v24 }
 0xe81   :  { %v1756_v56 = vadd.f32 %v1755_v52, %v1712_v2 }
 0xe82   :  { %v2001_v27 = vadd.f32 %v1999_v26, %v3565_v58 }
 0xe83   :  { %v1829_v0 = vpack.c.bf16 %v1756_v56, %v1756_v56 }
 0xe84   :  { %v1731_v53 = vpop.f32.mrf.mxu3  ;;  %v2007_v28 = vsel %vm181_vm4, %v2001_v27, 0.0 }
 0xe85   :  { %v1855_v1 = vunpack.c.l.b16 %v1829_v0  ;;  %v1732_v6 = vadd.f32 %v1731_v53, %v1697_v5 }
 0xe87   :  { %v1856_v4 = vpack.c.b16 %v1855_v1, %v1854_v55  ;;  %v1826_v10 = vpack.c.bf16 %v1732_v6, %v1732_v6 }
 0xe89   :  { %1868 = vmatpush.bf16.msra.mxu0 %v1856_v4  ;;  %v1832_v60 = vunpack.c.l.b16 %v1826_v10 }
 0xe8c   :  { %v1733_v8 = vpop.f32.mrf.mxu3  ;;  %2737 = vmatmul.msk.bf16.vlgmr.msra.gmra.mxu0 %vm464_vm10, %v1825_v7 }
 0xe8d   :  { %v1734_v11 = vadd.f32 %v1733_v8, %v1702_v45  ;;  %1982 = vmatpush.bf16.msrb.mxu0 %v2876_v51 }
 0xe8f   :  { %v1827_v13 = vpack.c.bf16 %v1734_v11, %v1734_v11 }
 0xe91   :  { %v1833_v15 = vunpack.c.l.b16 %v1827_v13 }
 0xe93   :  { %v1834_v20 = vpack.c.b16 %v1833_v15, %v1832_v60 }
 0xe95   :  { %1846 = vmatpush.bf16.msrb.mxu3 %v1834_v20 }
 0xe98   :  { %2736 = vmatmul.msk.bf16.vlgmr.msrb.gmra.mxu3 %vm464_vm10, %v1824_v21 }
 0xe99   :  { %1960 = vmatpush.bf16.msra.mxu3 %v2875_v49 }
 0xf09   :  { %v1870_v25 = vpop.f32.mrf.mxu0 }
 0xf0a   :  { %v1877_v14 = vsel %vm503_vm11, %v1870_v25, -inf }
 0xf0b   :  { %1878 = vmax.xlane.f32.xlu0 %v1877_v14 }
 0xf11   :  { %v1872_v9 = vpop.f32.mrf.mxu0 }
 0xf13   :  { %2008 = vadd.xlane.f32.xlu0 %v2007_v28 }
 0xf1b   :  { %v1848_v29 = vpop.f32.mrf.mxu3 }
 0xf1c   :  { %v1874_v30 = vsel %vm503_vm11, %v1848_v29, -inf }
 0xf1d   :  { %1875 = vmax.xlane.f32.xlu2 %v1874_v30 }
 0xf23   :  { %v1850_v57 = vpop.f32.mrf.mxu3 }
 0xf7e   :  { %v1879_v31 = vpop.xlane.xlu0 %1878 }
 0xf7f   :  { %v1881_v33 = vsub.f32 %v1870_v25, %v1879_v31  ;;  %v2877_v25 = vld [vmem:[%s3820_s16 + $0x10] sm:$0xff] }
 0xf81   :  { %v1884_v50 = vmul.f32 1.442695, %v1881_v33 }
 0xf83   :  { %2976 = vpow2.f32 %v1884_v50 }
 0xf86   :  { %v2009_v63 = vpop.xlane.xlu0 %2008 }
 0xf87   :  { %v2013_v34 = vmul.f32 %v2009_v63, %v3245_v32 }
 0xf89   :  { %v2977_v35 = vpop.eup %2976  ;;  %v3695_v23 = vsub.f32 %v2001_v27, %v2013_v34 }
 0xf8a   :  { %v1889_v58 = vsel %vm503_vm11, %v2977_v35, 0.0 }
 0xf8b   :  { %1890 = vadd.xlane.f32.xlu2 %v1889_v58  ;;  %v2017_v36 = vmul.f32 %v3695_v23, %v3695_v23  ;;  %v2926_v58 = vld [vmem:[%s3818_s14 + $0x1] ss:$0 sm:$0xff] }
 0xf8d   :  { %v2019_v39 = vsel %vm181_vm4, %v2017_v36, 0.0 }
 0xf90   :  { %v1876_v37 = vpop.xlane.xlu2 %1875 }
 0xf91   :  { %v1880_v38 = vsub.f32 %v1848_v29, %v1876_v37 }
 0xf93   :  { %v1882_v40 = vmul.f32 1.442695, %v1880_v38  ;;  %2020 = vadd.xlane.f32.xlu2 %v2019_v39  ;;  %v2927_v39 = vld [vmem:[%s3819_s15 + $0x1] ss:$0 sm:$0xff]  ;;  %s2385_s15 = sshll.u32 %s3831_s27, 4  ;;  %s3061_s27 = smov [#allocation3]   ;;  %s2386_s15 = int_to_ptr.hbm [resolvable:$true] %s2385_s15 }
 0xf94   :  { %s2372_s11 = sshll.u32 %s3061_s27, 4  ;;  %s2373_s11 = int_to_ptr.vmem [resolvable:$true] %s2372_s11 }
 0xf95   :  { %2978 = vpow2.f32 %v1882_v40 }
 0xf9b   :  { %v2979_v41 = vpop.eup %2978 }
 0xf9c   :  { %v1886_v61 = vsel %vm503_vm11, %v2979_v41, 0.0 }
 0xf9d   :  { %1887 = vadd.xlane.f32.xlu1 %v1886_v61 }
 0xffe   :  { %v1891_v59 = vpop.xlane.xlu2 %1890 }
 0xfff   :  { %2980 = vrcp.f32 %v1891_v59 }
0x1005   :  { %v2981_v42 = vpop.eup %2980 }
0x1006   :  { %v1895_v43 = vmul.f32 %v2981_v42, %v2977_v35  ;;  %v2021_v20 = vpop.xlane.xlu2 %2020 }
0x1007   :  { %v2025_v21 = vmul.f32 %v2021_v20, %v3245_v32 }
0x1008   :  { %v1897_v44 = vpack.c.bf16 %v1895_v43, %v1895_v43 }
0x1009   :  { %v2027_v24 = vadd.f32 1e-12, %v2025_v21 }
0x100a   :  { %2739 = vmatmul.msk.bf16.vlgmr.msra.gmra.mxu2 %vm503_vm11, %v1897_v44  ;;  %v2881_v44 = vld [vmem:[%s3822_s18 + $0x30] sm:$0xff] }
0x1010   :  { %v1888_v45 = vpop.xlane.xlu1 %1887 }
0x1011   :  { %2982 = vrcp.f32 %v1888_v45  ;;  %v2880_v45 = vld [vmem:[%s3822_s18 + $0x28] sm:$0xff] }
0x1012   :  { %2984 = vrsqrt.f32 %v2027_v24 }
0x1017   :  { %v2983_v46 = vpop.eup %2982 }
0x1018   :  { %v1894_v47 = vmul.f32 %v2983_v46, %v2979_v41  ;;  %v2928_v46 = vld [vmem:[%s3821_s17 + $0x1] ss:$0 sm:$0xff]  ;;  %s3866_s17 = sld [smem:[#allocation21_spill]] }
0x101a   :  { %v1896_v48 = vpack.c.bf16 %v1894_v47, %v1894_v47  ;;  %v2879_v47 = vld [vmem:[%s3822_s18 + $0x20] sm:$0xff] }
0x101c   :  { %2738 = vmatmul.msk.bf16.vlgmr.msra.gmra.mxu1 %vm503_vm11, %v1896_v48 }
0x108d   :  { %v1934_v2 = vpop.f32.mrf.mxu2 }
0x108e   :  { %v1939_v52 = vpack.c.bf16 %v1934_v2, %v1934_v2 }
0x1090   :  { %2753 = vmatmul.msk.bf16.vlgmr.msrb.gmra.mxu0 %vm464_vm10, %v1939_v52 }
0x1095   :  { %v1936_v54 = vpop.f32.mrf.mxu2 }
0x1099   :  { %v1915_v56 = vpop.f32.mrf.mxu1 }
0x109a   :  { %v1938_v62 = vpack.c.bf16 %v1915_v56, %v1915_v56 }
0x109c   :  { %2748 = vmatmul.msk.bf16.vlgmr.msra.gmra.mxu3 %vm464_vm10, %v1938_v62  ;;  %vm2035_vm10 = vweird.f32 %v2027_v24 }
0x10a1   :  { %v1917_v0 = vpop.f32.mrf.mxu1 }
0x110d   :  { %v1984_v53 = vpop.f32.mrf.mxu0 }
0x110e   :  { %v1989_v3 = vsel %vm181_vm4, %v1984_v53, 0.0 }
0x1115   :  { %v1986_v55 = vpop.f32.mrf.mxu0 }
0x111f   :  { %v1962_v1 = vpop.f32.mrf.mxu3 }
0x1120   :  { %v1988_v4 = vsel %vm181_vm4, %v1962_v1, 0.0 }
0x1121   :  { %v1990_v5 = vadd.f32 %v1989_v3, %v1988_v4 }
0x1123   :  { %1991 = vst.msk [vmem:[#allocation2 + $0x8] sm:$0xff] %vm181_vm4, %v1990_v5 }
0x1127   :  { %v1964_v6 = vpop.f32.mrf.mxu3 }
0x112a   :  { %v1993_v7 = vld [vmem:[#allocation2 + $0x8] sm:$0xff] }
0x112b   :  { %v2000_v8 = vadd.f32 %v3687_v22, %v1993_v7  ;;  %v2985_v22 = vpop.eup %2984 }
0x112c   :  { %v2030_v14 = vmul.f32 %v2985_v22, %v2027_v24  ;;  %vm2036_vm9 = vweird.f32 %v2985_v22 }
0x112d   :  { %v2002_v10 = vadd.f32 %v2000_v8, %v3646_v19  ;;  %v2878_v19 = vld [vmem:[%s3820_s16 + $0x18] sm:$0xff]  ;;  %vm2037_vm11 = vmor %vm2035_vm10, %vm2036_vm9  ;;  %vm2365_vm10 = vcmask 0  }
0x112e   :  { %2093 = vmatpush.bf16.msrb.mxu1 %v2878_v19  ;;  %v2031_v26 = vmul.f32 %v2985_v22, %v2030_v14 }
0x112f   :  { %v2010_v11 = vsel %vm181_vm4, %v2002_v10, 0.0 }
0x1130   :  { %2011 = vadd.xlane.f32.xlu1 %v2010_v11  ;;  %v2032_v29 = vmul.f32 0.5, %v2031_v26 }
0x1132   :  { %2094 = vmatpush.bf16.msrb.mxu1 %v2877_v25  ;;  %v2033_v30 = vsub.f32 1.5, %v2032_v29 }
0x1134   :  { %v2034_v31 = vmul.f32 %v2985_v22, %v2033_v30 }
0x1136   :  { %v2038_v63 = vsel %vm2037_vm11, %v2985_v22, %v2034_v31 }
0x1137   :  { %v2049_v36 = vmul.f32 %v2038_v63, %v3695_v23  ;;  %v2882_v23 = vld [vmem:[%s3822_s18 + $0x38] sm:$0xff]  ;;  %v2321_v63 = vld [vmem:[%s3865_s8] sm:$0x3]  ;;  %s2374_s18 = sshll.u32 %s3866_s17, 4  ;;  %s2375_s18 = int_to_ptr.hbm [resolvable:$true] %s2374_s18 }
0x1138   :  { %2165 = vmatpush.bf16.msrb.mxu2 %v2882_v23 }
0x1139   :  { %v2054_v40 = vmul.f32 %v2926_v58, %v2049_v36  ;;  %v2884_v36 = vld [vmem:[%s3826_s22 + $0x8] sm:$0xff] }
0x113a   :  { %2274 = vmatpush.bf16.msrb.mxu3 %v2884_v36 }
0x113b   :  { %v2059_v59 = vadd.f32 %v2927_v39, %v2054_v40 }
0x113c   :  { %2166 = vmatpush.bf16.msrb.mxu2 %v2881_v44 }
0x1140   :  { %2167 = vmatpush.bf16.msrb.mxu2 %v2880_v45 }
0x1144   :  { %2168 = vmatpush.bf16.msrb.mxu2 %v2879_v47 }
0x11a3   :  { %v2012_v12 = vpop.xlane.xlu1 %2011 }
0x11a4   :  { %v2014_v13 = vmul.f32 %v2012_v12, %v3245_v32 }
0x11a6   :  { %v2016_v60 = vsub.f32 %v2002_v10, %v2014_v13 }
0x11a8   :  { %v2018_v15 = vmul.f32 %v2016_v60, %v2016_v60 }
0x11aa   :  { %v2022_v17 = vsel %vm181_vm4, %v2018_v15, 0.0  ;;  %v2929_v15 = vld [vmem:[%s3823_s19 + $0x1] ss:$0 sm:$0xff] }
0x11ab   :  { %2023 = vadd.xlane.f32.xlu0 %v2022_v17 }
0x121e   :  { %v2024_v27 = vpop.xlane.xlu0 %2023 }
0x121f   :  { %v2026_v9 = vmul.f32 %v2024_v27, %v3245_v32 }
0x1221   :  { %v2028_v28 = vadd.f32 1e-12, %v2026_v9 }
0x1223   :  { %2986 = vrsqrt.f32 %v2028_v28  ;;  %vm2045_vm1 = vweird.f32 %v2028_v28 }
0x1229   :  { %v2987_v57 = vpop.eup %2986 }
0x122a   :  { %v2040_v33 = vmul.f32 %v2987_v57, %v2028_v28  ;;  %vm2046_vm0 = vweird.f32 %v2987_v57 }
0x122b   :  { %vm2047_vm2 = vmor %vm2045_vm1, %vm2046_vm0 }
0x122c   :  { %v2041_v50 = vmul.f32 %v2987_v57, %v2040_v33 }
0x122e   :  { %v2042_v34 = vmul.f32 0.5, %v2041_v50 }
0x1230   :  { %v2043_v35 = vsub.f32 1.5, %v2042_v34 }
0x1232   :  { %v2044_v37 = vmul.f32 %v2987_v57, %v2043_v35 }
0x1234   :  { %v2048_v38 = vsel %vm2047_vm2, %v2987_v57, %v2044_v37 }
0x1235   :  { %v2050_v41 = vmul.f32 %v2048_v38, %v2016_v60 }
0x1237   :  { %v2055_v61 = vmul.f32 %v2926_v58, %v2050_v41 }
0x1239   :  { %v2060_v42 = vadd.f32 %v2927_v39, %v2055_v61  ;;  %v2883_v39 = vld [vmem:[%s3826_s22] sm:$0xff] }
0x123a   :  { %2275 = vmatpush.bf16.msrb.mxu3 %v2883_v39 }
0x123b   :  { %v2061_v43 = vpack.c.bf16 %v2060_v42, %v2059_v59 }
0x123d   :  { %2770 = vmatmul.msk.bf16.vlgmr.msrb.gmra.mxu1 %vm181_vm4, %v2061_v43 }
0x12ba   :  { %v2096_v48 = vpop.f32.mrf.mxu1 }
0x12bb   :  { %v2097_v51 = vadd.f32 %v2928_v46, %v2096_v48  ;;  %v2930_v48 = vld [vmem:[%s3824_s20 + $0x1] ss:$0 sm:$0xff] }
0x12bd   :  { %v2103_v49 = vmul.f32 0.044715, %v2097_v51  ;;  %v2101_v8 = vmul.f32 0.5, %v2097_v51 }
0x12bf   :  { %v2105_v2 = vmul.f32 %v2103_v49, %v2097_v51 }
0x12c1   :  { %v2107_v52 = vmul.f32 %v2105_v2, %v2097_v51 }
0x12c2   :  { %v2098_v54 = vpop.f32.mrf.mxu1 }
0x12c3   :  { %v2109_v56 = vadd.f32 %v2107_v52, %v2097_v51  ;;  %v2099_v62 = vadd.f32 %v2928_v46, %v2098_v54  ;;  %v2931_v52 = vld [vmem:[%s3825_s21 + $0x1] ss:$0 sm:$0xff] }
0x12c5   :  { %v2104_v0 = vmul.f32 0.044715, %v2099_v62  ;;  %v2111_v53 = vmul.f32 0.7978846, %v2109_v56  ;;  %v2102_v10 = vmul.f32 0.5, %v2099_v62 }
0x12c7   :  { %v2106_v55 = vmul.f32 %v2104_v0, %v2099_v62  ;;  %2988 = vtanh.f32 %v2111_v53 }
0x12c9   :  { %v2108_v1 = vmul.f32 %v2106_v55, %v2099_v62 }
0x12cb   :  { %v2110_v3 = vadd.f32 %v2108_v1, %v2099_v62 }
0x12cd   :  { %v2112_v4 = vmul.f32 0.7978846, %v2110_v3  ;;  %v2989_v5 = vpop.eup %2988 }
0x12ce   :  { %v2115_v6 = vadd.f32 1.0, %v2989_v5 }
0x12cf   :  { %2990 = vtanh.f32 %v2112_v4 }
0x12d0   :  { %v2117_v12 = vmul.f32 %v2115_v6, %v2101_v8 }
0x12d5   :  { %v2991_v7 = vpop.eup %2990 }
0x12d6   :  { %v2116_v11 = vadd.f32 1.0, %v2991_v7 }
0x12d8   :  { %v2118_v13 = vmul.f32 %v2116_v11, %v2102_v10  ;;  %v2886_v10 = vld [vmem:[%s3828_s24 + $0x8] sm:$0xff]  ;;  %v2885_v11 = vld [vmem:[%s3828_s24] sm:$0xff] }
0x12d9   :  { %2312 = vmatpush.bf16.msra.mxu0 %v2886_v10 }
0x12da   :  { %v2119_v60 = vpack.c.bf16 %v2118_v13, %v2117_v12  ;;  %v2932_v12 = vld [vmem:[%s3827_s23] ss:$0 sm:$0xff]  ;;  %s3059_s23 = smov [#allocation5]  }
0x12db   :  { %s2383_s24 = sshll.u32 %s3059_s23, 4  ;;  %s2384_s24 = int_to_ptr.vmem [resolvable:$true] %s2383_s24 }
0x12dc   :  { %2796 = vmatmul.msk.bf16.vlgmr.msrb.gmra.mxu2 %vm1157_vm6, %v2119_v60 }
0x12dd   :  { %2313 = vmatpush.bf16.msra.mxu0 %v2885_v11 }
0x135f   :  { %v2170_v17 = vpop.f32.mrf.mxu2 }
0x1360   :  { %v2171_v20 = vadd.f32 %v2929_v15, %v2170_v17 }
0x1362   :  { %v2175_v21 = vadd.f32 %v2171_v20, %v2059_v59 }
0x1364   :  { %v2181_v24 = vsel %vm181_vm4, %v2175_v21, 0.0 }
0x1365   :  { %2182 = vadd.xlane.f32.xlu2 %v2181_v24 }
0x1367   :  { %v2172_v19 = vpop.f32.mrf.mxu2 }
0x1368   :  { %v2173_v22 = vadd.f32 %v2929_v15, %v2172_v19 }
0x136a   :  { %v2176_v25 = vadd.f32 %v2173_v22, %v2060_v42 }
0x136c   :  { %v2184_v14 = vsel %vm181_vm4, %v2176_v25, 0.0 }
0x136d   :  { %2185 = vadd.xlane.f32.xlu1 %v2184_v14 }
0x13d8   :  { %v2183_v26 = vpop.xlane.xlu2 %2182 }
0x13d9   :  { %v2187_v27 = vmul.f32 %v2183_v26, %v3245_v32 }
0x13db   :  { %v2189_v9 = vsub.f32 %v2175_v21, %v2187_v27  ;;  %v2933_v21 = vld [vmem:[%s3829_s25] ss:$0 sm:$0xff] }
0x13dd   :  { %v2191_v28 = vmul.f32 %v2189_v9, %v2189_v9 }
0x13df   :  { %v2193_v29 = vsel %vm181_vm4, %v2191_v28, 0.0 }
0x13e0   :  { %v2186_v30 = vpop.xlane.xlu1 %2185  ;;  %2194 = vadd.xlane.f32.xlu1 %v2193_v29 }
0x13e1   :  { %v2188_v57 = vmul.f32 %v2186_v30, %v3245_v32 }
0x13e3   :  { %v2190_v31 = vsub.f32 %v2176_v25, %v2188_v57 }
0x13e5   :  { %v2192_v33 = vmul.f32 %v2190_v31, %v2190_v31 }
0x13e7   :  { %v2196_v50 = vsel %vm181_vm4, %v2192_v33, 0.0 }
0x13e8   :  { %2197 = vadd.xlane.f32.xlu0 %v2196_v50 }
0x13fc   :  { %2323 = vperm.xlu0 %2897, %v2321_v63  }
0x1453   :  { %v2195_v34 = vpop.xlane.xlu1 %2194 }
0x1454   :  { %v2199_v35 = vmul.f32 %v2195_v34, %v3245_v32 }
0x1456   :  { %v2201_v58 = vadd.f32 1e-12, %v2199_v35 }
0x1458   :  { %2992 = vrsqrt.f32 %v2201_v58  ;;  %vm2209_vm5 = vweird.f32 %v2201_v58 }
0x145b   :  { %v2198_v37 = vpop.xlane.xlu0 %2197 }
0x145c   :  { %v2200_v38 = vmul.f32 %v2198_v37, %v3245_v32 }
0x145e   :  { %v2993_v40 = vpop.eup %2992  ;;  %v2202_v41 = vadd.f32 1e-12, %v2200_v38 }
0x145f   :  { %v2204_v61 = vmul.f32 %v2993_v40, %v2201_v58  ;;  %vm2210_vm3 = vweird.f32 %v2993_v40  ;;  %v3060_v58 = vmov 2.0  }
0x1460   :  { %2994 = vrsqrt.f32 %v2202_v41  ;;  %vm2211_vm6 = vmor %vm2209_vm5, %vm2210_vm3  ;;  %vm2219_vm8 = vweird.f32 %v2202_v41 }
0x1461   :  { %v2205_v59 = vmul.f32 %v2993_v40, %v2204_v61 }
0x1463   :  { %v2206_v42 = vmul.f32 0.5, %v2205_v59 }
0x1465   :  { %v2207_v43 = vsub.f32 1.5, %v2206_v42 }
0x1466   :  { %v2995_v23 = vpop.eup %2994 }
0x1467   :  { %v2208_v44 = vmul.f32 %v2993_v40, %v2207_v43  ;;  %v2214_v45 = vmul.f32 %v2995_v23, %v2202_v41  ;;  %vm2220_vm7 = vweird.f32 %v2995_v23 }
0x1468   :  { %vm2221_vm12 = vmor %vm2219_vm8, %vm2220_vm7 }
0x1469   :  { %v2212_v46 = vsel %vm2211_vm6, %v2993_v40, %v2208_v44  ;;  %v2215_v32 = vmul.f32 %v2995_v23, %v2214_v45 }
0x146a   :  { %v2223_v51 = vmul.f32 %v2212_v46, %v2189_v9 }
0x146b   :  { %v2216_v47 = vmul.f32 0.5, %v2215_v32 }
0x146c   :  { %v2228_v54 = vmul.f32 %v2930_v48, %v2223_v51 }
0x146d   :  { %v2217_v49 = vsub.f32 1.5, %v2216_v47 }
0x146e   :  { %v2233_v0 = vadd.f32 %v2931_v52, %v2228_v54  ;;  %v2324_v24 = vpop.permute.xlu0 %2323 }
0x146f   :  { %v2218_v2 = vmul.f32 %v2995_v23, %v2217_v49  ;;  %vm2325_vm15 = vcmp.eq.s32.totalorder %v2324_v24, %v3235_v16 }
0x1470   :  { %v2235_v1 = vpack.c.bf16 %v2233_v0, %v2233_v0  ;;  %v2326_v14 = vsel %vm2325_vm15, 1.0, %v3057_v18 }
0x1471   :  { %v2222_v56 = vsel %vm2221_vm12, %v2995_v23, %v2218_v2 }
0x1472   :  { %v2224_v62 = vmul.f32 %v2222_v56, %v2190_v31  ;;  %v2247_v5 = vunpack.c.l.b16 %v2235_v1 }
0x1474   :  { %v2229_v53 = vmul.f32 %v2930_v48, %v2224_v62 }
0x1476   :  { %v2234_v55 = vadd.f32 %v2931_v52, %v2229_v53 }
0x1478   :  { %v2236_v3 = vpack.c.bf16 %v2234_v55, %v2234_v55 }
0x147a   :  { %v2248_v4 = vunpack.c.l.b16 %v2236_v3 }
0x147c   :  { %v2249_v6 = vrot.slane %v2248_v4, 7 }
0x147e   :  { %v2251_v7 = vsel %vm2250_vm13, %v2249_v6, %v2247_v5 }
0x147f   :  { %v2252_v8 = vpack.c.b16 %v2251_v7, %v2251_v7 }
0x1481   :  { %2807 = vmatmul.msk.bf16.vlgmr.msrb.gmra.mxu3 %vm181_vm4, %v2252_v8 }
0x1504   :  { %v2277_v13 = vpop.f32.mrf.mxu3 }
0x1505   :  { %v2278_v60 = vadd.f32 %v2932_v12, %v2277_v13 }
0x1507   :  { %2996 = vtanh.f32 %v2278_v60 }
0x150c   :  { %v2279_v15 = vpop.f32.mrf.mxu3 }
0x150d   :  { %v2997_v17 = vpop.eup %2996 }
0x150e   :  { %v2282_v20 = vpack.c.bf16 %v2997_v17, %v2997_v17 }
0x1510   :  { %2816 = vmatmul.msk.bf16.vlgmr.msra.gmra.mxu0 %vm181_vm4, %v2282_v20  ;;  %vm2344_vm4 = vcmask 1024  }
0x158d   :  { %v2315_v19 = vpop.f32.mrf.mxu0 }
0x158e   :  { %v2316_v22 = vadd.f32 %v2933_v21, %v2315_v19 }
0x1590   :  { %v2327_v25 = vsel %vm2319_vm14, %v2316_v22, -inf  ;;  %2320 = vst.msk [vmem:[#allocation5] sm:$0x3] %vm2319_vm14, %v2316_v22  ;;  %v2339_v26 = vmul.f32 %v2326_v14, %v2316_v22 }
0x1591   :  { %2328 = vmax.xlane.f32.xlu2 %v2327_v25  ;;  %2388 = dma.vmem_to_hbm [thread:$0]  %s2384_s24, 32, %s2386_s15, [#allocation6]  }
0x1592   :  { %v2340_v9 = vsel %vm2319_vm14, %v2339_v26, 0.0 }
0x1595   :  { %v2317_v27 = vpop.f32.mrf.mxu0 }
0x1599   :  { %2341 = vadd.xlane.f32.xlu2 %v2340_v9 }
0x1604   :  { %v2329_v28 = vpop.xlane.xlu2 %2328 }
0x1605   :  { %v2330_v29 = vsub.f32 %v2316_v22, %v2329_v28 }
0x1607   :  { %v2331_v30 = vmul.f32 1.442695, %v2330_v29 }
0x1609   :  { %2998 = vpow2.f32 %v2331_v30 }
0x160c   :  { %v2342_v34 = vpop.xlane.xlu2 %2341 }
0x160f   :  { %v2999_v57 = vpop.eup %2998 }
0x1610   :  { %v2333_v31 = vsel %vm2319_vm14, %v2999_v57, 0.0 }
0x1611   :  { %2334 = vadd.xlane.f32.xlu1 %v2333_v31 }
0x1684   :  { %v2335_v16 = vpop.xlane.xlu1 %2334 }
0x1685   :  { %3000 = vlog2.f32 %v2335_v16 }
0x1686   :  { %3002 = vrcp.f32 %v3060_v58 }
0x168b   :  { %v3001_v33 = vpop.eup %3000 }
0x168c   :  { %v2337_v50 = vmul.f32 0.6931472, %v3001_v33  ;;  %v3003_v36 = vpop.eup %3002 }
0x168d   :  { %v2356_v37 = vmul.f32 2.0, %v3003_v36  ;;  %vm2360_vm9 = vweird.f32 %v3003_v36 }
0x168e   :  { %v2338_v63 = vadd.f32 %v2337_v50, %v2329_v28 }
0x168f   :  { %v2357_v38 = vsub.f32 1.0, %v2356_v37 }
0x1690   :  { %v2343_v18 = vsub.f32 %v2338_v63, %v2342_v34 }
0x1691   :  { %v2358_v61 = vmul.f32 %v3003_v36, %v2357_v38 }
0x1692   :  { %v2345_v35 = vsel %vm2344_vm4, %v2343_v18, 0.0 }
0x1693   :  { %2346 = vadd.xlane.f32.xlu1 %v2345_v35  ;;  %v2359_v43 = vadd.f32 %v3003_v36, %v2358_v61 }
0x1695   :  { %v2361_v45 = vsel %vm2360_vm9, %v3003_v36, %v2359_v43 }
0x1706   :  { %v2347_v39 = vpop.xlane.xlu1 %2346 }
0x1707   :  { %v2348_v40 = vrot.slane %v2347_v39, 4 }
0x1709   :  { %v2349_v41 = vadd.f32 %v2348_v40, %v2347_v39 }
0x170b   :  { %v2350_v59 = vrot.slane %v2349_v41, 2 }
0x170d   :  { %v2351_v42 = vadd.f32 %v2350_v59, %v2349_v41 }
0x170f   :  { %v2352_v23 = vrot.slane %v2351_v42, 1 }
0x1711   :  { %v2353_v44 = vadd.f32 %v2352_v23, %v2351_v42 }
0x1713   :  { %2887 = vpush %v2353_v44 }
0x1714   :  { %2889 = vpush %v2361_v45 }
0x1744   :  { %s2888_s1 = spop %2887 }
0x1745   :  { %s2890_s19 = spop %2889 }
0x1746   :  { %s2363_s30 = smul.f32 %s2890_s19, %s2888_s1 }
0x1748   :  { %v2364_v46 = vstv %s2363_s30 }
0x1749   :  { %2366 = vst.msk [vmem:[#allocation3] sm:$0x1] %vm2365_vm10, %v2364_v46 }
0x174a   :  { %2377 = dma.vmem_to_hbm [thread:$0]  %s2373_s11, 16, %s2375_s18, [#allocation4]  }
0x174b   :  { %3052 = dma.done.wait [#allocation4], 16  }
0x174c   :  { %3053 = vsyncadd [#allocation4], 4294967280 }
0x174d   :  { %3054 = dma.done.wait [#allocation6], 32  }
0x174e   :  { %3055 = vsyncadd [#allocation6], 4294967264 }
0x174f   :  { %2397 = vsyncpa [#allocation4], 1 }
0x1750   :  { %2398 = vsyncpa [#allocation6], 1 }

</bundles_post_ra>
